<compile_context>
chip_gen: v7x
topology: tpu7x:2x2x1
jax: 0.10.0
libtpu: 0.0.40
codegen_flags: <defaults>
</compile_context>

<pallas_src>
import functools

import jax
import jax.numpy as jnp
from jax import lax
from jax.experimental import pallas as pl
from jax.experimental.pallas import tpu as pltpu


# ---- stat slot indices (rows of the per-block partial-stats tile) -----------
_S_POS_SUM = 0   # sum(loss * positive)                (BalanceCrossEntropyLoss)
_S_POS_CNT = 1   # sum(positive)
_S_NEG_CNT = 2   # sum(negative)
_S_DICE_I = 3    # sum(pred_ori * ori_gt * ori_mask)   (DiceLoss)
_S_DICE_P = 4    # sum(pred_ori * ori_mask)
_S_DICE_G = 5    # sum(ori_gt * ori_mask)
_S_L1X = 6       # sum(|dis_x - gt_x| * ori_gt)        (MaskL1Loss x)
_S_L1Y = 7       # sum(|dis_y - gt_y| * ori_gt)        (MaskL1Loss y)
_S_MSUM = 8      # sum(ori_gt)                         (MaskL1 mask sum)
_N_USED = 9

_LANE_CHOICES = (512, 256, 128)   # lane-dense slab widths (multiples of 128)
_TM_MAX = 1024                    # rows per grid step (f32 block = 2 MiB)
_ROW_ALIGN = 32                   # satisfies min-tile sublane rules for
                                  # f32 (8), bf16 (16) and int8/u8 (32) blocks


def _round_up(x, m):
    return ((x + m - 1) // m) * m


def _vmem_capacity_bytes(default=64 << 20):
    """Physical per-core VMEM; falls back to the smallest modern chip (v7x)."""
    try:
        cap = int(pltpu.get_tpu_info().vmem_capacity_bytes)
        if cap > 0:
            return cap
    except Exception:
        pass
    return default


def _fused_loss_kernel(pb_ref, gt_ref, mask_ref,
                       po_ref, ogt_ref, omask_ref,
                       dx_ref, gx_ref, dy_ref, gy_ref,
                       negloss_ref, stats_ref, *, rows_valid):
    f32 = jnp.float32
    tm, lanes = pb_ref.shape

    pb = pb_ref[...].astype(f32)
    gt = gt_ref[...].astype(f32)
    mask = mask_ref[...].astype(f32)
    po = po_ref[...].astype(f32)
    ogt = ogt_ref[...].astype(f32)
    om = omask_ref[...].astype(f32)
    dx = dx_ref[...].astype(f32)
    gx = gx_ref[...].astype(f32)
    dy = dy_ref[...].astype(f32)
    gy = gy_ref[...].astype(f32)

    if rows_valid is not None:
        # Ragged tail handled in-kernel (no jnp.pad copies of the inputs):
        # rows at/after `rows_valid` of the flat (rows, lanes) slab are
        # out-of-bounds reads (stale VMEM).  Sanitize them so no NaN/Inf can
        # poison the sums (NaN * 0 == NaN) and so neg_loss there is exactly 0.
        row0 = pl.program_id(0) * tm
        rid = lax.broadcasted_iota(jnp.int32, (tm, lanes), 0) + row0
        valid = rid < rows_valid
        zero = jnp.zeros((), f32)
        pb = jnp.where(valid, pb, 0.5)      # keeps the log terms finite
        gt = jnp.where(valid, gt, zero)
        mask = jnp.where(valid, mask, zero)
        po = jnp.where(valid, po, zero)
        ogt = jnp.where(valid, ogt, zero)
        om = jnp.where(valid, om, zero)
        dx = jnp.where(valid, dx, zero)
        gx = jnp.where(valid, gx, zero)
        dy = jnp.where(valid, dy, zero)
        gy = jnp.where(valid, gy, zero)

    # torch .byte() truncation (gt*mask is non-negative and < 256 here)
    positive = jnp.floor(gt * mask)
    negative = jnp.floor((1.0 - gt) * mask)

    # torch binary_cross_entropy clamps log terms at -100
    log_p = jnp.maximum(jnp.log(pb), -100.0)
    log_1mp = jnp.maximum(jnp.log(1.0 - pb), -100.0)
    loss = -(gt * log_p + (1.0 - gt) * log_1mp)

    pos_loss = loss * positive
    neg_loss = loss * negative
    negloss_ref[...] = neg_loss.astype(negloss_ref.dtype)   # for host-side OHEM

    # Per-block, per-lane partial sums (sublane reduce only).  The tiny
    # cross-lane / cross-block reduction happens in plain JAX, so there is no
    # carried accumulator and the single grid axis stays fully "parallel"
    # (sharded across both v7x TensorCores).
    def put(row, x):
        stats_ref[row:row + 1, :] = jnp.sum(x, axis=0, keepdims=True)

    put(_S_POS_SUM, pos_loss)
    put(_S_POS_CNT, positive)
    put(_S_NEG_CNT, negative)
    put(_S_DICE_I, po * ogt * om)
    put(_S_DICE_P, po * om)
    put(_S_DICE_G, ogt * om)
    put(_S_L1X, jnp.abs(dx - gx) * ogt)
    put(_S_L1Y, jnp.abs(dy - gy) * ogt)
    put(_S_MSUM, ogt)


def dis_ori_focus_loss(pred, batch, eps=1e-6, negative_ratio=3.0,
                       negloss_dtype=jnp.float32):
    """Pallas equivalent of DisOriFocusLoss.forward(pred, batch) -> (loss, metrics).

    All maps share the (N, 1, H, W) layout of the PyTorch module; the math is
    purely elementwise + global reductions, so everything is streamed as one
    lane-dense slab.  The binary mask maps (gt/mask/ori_gt/ori_mask) may be
    bf16 / int8 — they are cast to f32 in-kernel — which trims HBM traffic.
    `negloss_dtype=jnp.bfloat16` halves the OHEM writeback/sort stream at the
    cost of exact top-k parity (default keeps f32 for bit-parity).
    """
    pb = pred["binary"]
    total = pb.size

    # --- lane-dense flattening (metadata-only reshape whenever possible) -----
    lanes = None
    for cand in _LANE_CHOICES:
        if total % cand == 0:
            lanes = cand
            break
    if lanes is None:
        lanes = 128
        pad = _round_up(total, lanes) - total
    else:
        pad = 0
    rows = (total + pad) // lanes

    def prep(x):
        flat = jnp.reshape(x, (-1,))
        if pad:
            # TODO(synk): rare fallback (map size not a multiple of 128); this
            # copies every stream once.  Could be removed with 1-D blocks plus
            # in-kernel lane masking.  Zero padding is numerically inert.
            flat = jnp.pad(flat, (0, pad))
        return jnp.reshape(flat, (rows, lanes))

    inputs = [prep(x) for x in (
        pred["binary"], batch["gt"], batch["mask"],
        pred["ori_binary"], batch["ori_gt"], batch["ori_mask"],
        pred["dis_x"], batch["gt_x"], pred["dis_y"], batch["gt_y"])]

    # --- tile / grid selection, per-chip VMEM aware ---------------------------
    in_bytes_per_row = lanes * sum(x.dtype.itemsize for x in inputs)
    out_bytes_per_row = lanes * jnp.dtype(negloss_dtype).itemsize

    def vmem_needed(tm_):
        # double-buffered input + negloss streams, plus stats + compiler margin
        return (2 * tm_ * (in_bytes_per_row + out_bytes_per_row)
                + 2 * _N_USED * lanes * 4 + (4 << 20))

    budget = _vmem_capacity_bytes() - (12 << 20)   # keep headroom under VMEM

    tm = min(_TM_MAX, _round_up(rows, _ROW_ALIGN))
    while tm > _ROW_ALIGN and vmem_needed(tm) > budget:
        tm = _round_up(tm // 2, _ROW_ALIGN)
    g = pl.cdiv(rows, tm)

    # Prefer an even number of blocks so both v7x TensorCores get work (the
    # single grid axis is "parallel").  Only bother when the map is big enough
    # that splitting does not shrink tiles into per-step-overhead territory.
    if g % 2 == 1 and rows >= 4 * _ROW_ALIGN:
        tm_alt = _round_up(pl.cdiv(rows, g + 1), _ROW_ALIGN)
        if tm_alt >= _ROW_ALIGN and pl.cdiv(rows, tm_alt) % 2 == 0:
            tm = tm_alt
            g = pl.cdiv(rows, tm)

    rows_valid = rows if g * tm != rows else None    # static ragged-tail flag
    vmem_limit = int(min(max(vmem_needed(tm), 16 << 20), max(budget, 16 << 20)))

    kernel = functools.partial(_fused_loss_kernel, rows_valid=rows_valid)
    tile_spec = pl.BlockSpec((tm, lanes), lambda i: (i, 0))

    negloss, stats = pl.pallas_call(
        kernel,
        out_shape=(
            jax.ShapeDtypeStruct((rows, lanes), negloss_dtype),
            jax.ShapeDtypeStruct((g, _N_USED, lanes), jnp.float32),
        ),
        grid_spec=pltpu.PrefetchScalarGridSpec(
            num_scalar_prefetch=0,
            grid=(g,),
            in_specs=[tile_spec] * len(inputs),
            out_specs=(
                pl.BlockSpec((tm, lanes), lambda i: (i, 0)),
                pl.BlockSpec((None, _N_USED, lanes), lambda i: (i, 0, 0)),
            ),
        ),
        compiler_params=pltpu.CompilerParams(
            dimension_semantics=("parallel",),
            vmem_limit_bytes=vmem_limit,
        ),
    )(*inputs)

    s = jnp.sum(stats, axis=(0, 2))      # tiny cross-block / cross-lane reduce

    # --- BalanceCrossEntropyLoss(pred['binary'], gt, mask) -------------------
    pos_sum = s[_S_POS_SUM]
    pos_count = s[_S_POS_CNT].astype(jnp.int32)
    neg_total = s[_S_NEG_CNT].astype(jnp.int32)
    neg_count = jnp.minimum(
        neg_total,
        (pos_count.astype(jnp.float32) * negative_ratio).astype(jnp.int32))

    # TODO(synk): dynamic-k OHEM selection: Mosaic has no sort/scatter, so the
    # exact top-k over the negative losses stays as an XLA sort.  Sum only the
    # top-k slice (not a full-length cumsum) to match torch's topk().sum()
    # without rounding drift.  An in-kernel histogram + threshold pass would
    # remove the sort and this writeback stream entirely.
    neg_flat = negloss.reshape(-1).astype(jnp.float32)
    sorted_desc = -jnp.sort(-neg_flat)
    topk_mask = jnp.arange(sorted_desc.shape[0], dtype=jnp.int32) < neg_count
    topk_sum = jnp.sum(jnp.where(topk_mask, sorted_desc, 0.0))
    denom = pos_count.astype(jnp.float32) + neg_count.astype(jnp.float32) + eps
    bce_loss = (pos_sum + topk_sum) / denom

    # --- DiceLoss(pred['ori_binary'], ori_gt, ori_mask) ----------------------
    ori_loss = 1.0 - 2.0 * s[_S_DICE_I] / (s[_S_DICE_P] + s[_S_DICE_G] + eps)

    # --- MaskL1Loss(dis_x, gt_x, ori_gt) / (dis_y, gt_y, ori_gt) -------------
    msum = s[_S_MSUM]
    safe = jnp.where(msum > 0, msum, 1.0)
    disx_loss = jnp.where(msum > 0, s[_S_L1X] / safe, 0.0)
    disy_loss = jnp.where(msum > 0, s[_S_L1Y] / safe, 0.0)

    loss = bce_loss * 6 + disx_loss * 0.1 + disy_loss * 0.1 + 3 * ori_loss
    metrics = dict(bce_loss=bce_loss, diy_loss=disy_loss,
                   dix_loss=disx_loss, ori_loss=ori_loss)
    return loss, metrics


# ----------------------------- pure-JAX references ---------------------------
def _balance_bce_ref(pred, gt, mask, negative_ratio=3.0, eps=1e-6):
    pred = pred.astype(jnp.float32)
    gt = gt.astype(jnp.float32)
    mask = mask.astype(jnp.float32)
    positive = jnp.floor(gt * mask)
    negative = jnp.floor((1.0 - gt) * mask)
    loss = -(gt * jnp.maximum(jnp.log(pred), -100.0)
             + (1.0 - gt) * jnp.maximum(jnp.log(1.0 - pred), -100.0))
    pos_sum = jnp.sum(loss * positive)
    pos_count = jnp.sum(positive).astype(jnp.int32)
    neg_total = jnp.sum(negative).astype(jnp.int32)
    neg_count = jnp.minimum(
        neg_total,
        (pos_count.astype(jnp.float32) * negative_ratio).astype(jnp.int32))
    neg_flat = (loss * negative).reshape(-1)
    sorted_desc = -jnp.sort(-neg_flat)
    topk_mask = jnp.arange(sorted_desc.shape[0], dtype=jnp.int32) < neg_count
    topk_sum = jnp.sum(jnp.where(topk_mask, sorted_desc, 0.0))
    return (pos_sum + topk_sum) / (
        pos_count.astype(jnp.float32) + neg_count.astype(jnp.float32) + eps)


def _dice_ref(pred, gt, mask, eps=1e-6):
    pred = pred.astype(jnp.float32)
    gt = gt.astype(jnp.float32)
    mask = mask.astype(jnp.float32)
    inter = jnp.sum(pred * gt * mask)
    union = jnp.sum(pred * mask) + jnp.sum(gt * mask) + eps
    return 1.0 - 2.0 * inter / union


def _mask_l1_ref(pred, gt, mask):
    pred = pred.astype(jnp.float32)
    gt = gt.astype(jnp.float32)
    mask = mask.astype(jnp.float32)
    msum = jnp.sum(mask)
    safe = jnp.where(msum > 0, msum, 1.0)
    return jnp.where(msum > 0, jnp.sum(jnp.abs(pred - gt) * mask) / safe, 0.0)


def _make_inputs(key, shape, mask_dtype):
    ks = jax.random.split(key, 10)
    pred = {
        "binary": jax.nn.sigmoid(jax.random.normal(ks[0], shape, jnp.float32)),
        "ori_binary": jax.nn.sigmoid(jax.random.normal(ks[1], shape, jnp.float32)),
        "dis_x": jax.random.normal(ks[2], shape, jnp.float32),
        "dis_y": jax.random.normal(ks[3], shape, jnp.float32),
    }
    batch = {
        "gt": jax.random.bernoulli(ks[4], 0.3, shape).astype(mask_dtype),
        "mask": jax.random.bernoulli(ks[5], 0.9, shape).astype(mask_dtype),
        "ori_gt": jax.random.bernoulli(ks[6], 0.3, shape).astype(mask_dtype),
        "ori_mask": jax.random.bernoulli(ks[7], 0.9, shape).astype(mask_dtype),
        "gt_x": jax.random.normal(ks[8], shape, jnp.float32),
        "gt_y": jax.random.normal(ks[9], shape, jnp.float32),
    }
    return pred, batch


def _check_case(key, shape, mask_dtype):
    pred, batch = _make_inputs(key, shape, mask_dtype)
    loss, metrics = dis_ori_focus_loss(pred, batch)
    loss = jax.block_until_ready(loss)

    ref_bce = _balance_bce_ref(pred["binary"], batch["gt"], batch["mask"])
    ref_ori = _dice_ref(pred["ori_binary"], batch["ori_gt"], batch["ori_mask"])
    ref_dx = _mask_l1_ref(pred["dis_x"], batch["gt_x"], batch["ori_gt"])
    ref_dy = _mask_l1_ref(pred["dis_y"], batch["gt_y"], batch["ori_gt"])
    ref_loss = ref_bce * 6 + ref_dx * 0.1 + ref_dy * 0.1 + 3 * ref_ori

    assert jnp.allclose(loss, ref_loss, rtol=1e-5, atol=1e-5), (loss, ref_loss)
    assert jnp.allclose(metrics["bce_loss"], ref_bce, rtol=1e-5, atol=1e-5)
    assert jnp.allclose(metrics["ori_loss"], ref_ori, rtol=1e-5, atol=1e-5)
    assert jnp.allclose(metrics["dix_loss"], ref_dx, rtol=1e-5, atol=1e-5)
    assert jnp.allclose(metrics["diy_loss"], ref_dy, rtol=1e-5, atol=1e-5)


if __name__ == "__main__":
    key = jax.random.PRNGKey(0)
    k1, k2 = jax.random.split(key)

    # Case 1: size divisible by 512 -> pad-free path with a ragged row tail
    # (rows=10 < tile rows=32) and bf16 mask maps (reduced HBM traffic).
    _check_case(k1, (2, 1, 40, 64), jnp.bfloat16)

    # Case 2: size NOT a multiple of 128 -> exercises the rare pad fallback,
    # with f32 masks.
    _check_case(k2, (2, 1, 20, 40), jnp.float32)

    print("KERNEL_OK")
</pallas_src>

<mosaic_0001>
module attributes {stable_mosaic.version = 11 : i64} {
  func.func @_fused_loss_kernel(%arg0: i32, %arg1: memref<32x512xf32, #tpu.memory_space<vmem>>, %arg2: memref<32x512xbf16, #tpu.memory_space<vmem>>, %arg3: memref<32x512xbf16, #tpu.memory_space<vmem>>, %arg4: memref<32x512xf32, #tpu.memory_space<vmem>>, %arg5: memref<32x512xbf16, #tpu.memory_space<vmem>>, %arg6: memref<32x512xbf16, #tpu.memory_space<vmem>>, %arg7: memref<32x512xf32, #tpu.memory_space<vmem>>, %arg8: memref<32x512xf32, #tpu.memory_space<vmem>>, %arg9: memref<32x512xf32, #tpu.memory_space<vmem>>, %arg10: memref<32x512xf32, #tpu.memory_space<vmem>>, %arg11: memref<32x512xf32, #tpu.memory_space<vmem>>, %arg12: memref<1x9x512xf32, #tpu.memory_space<vmem>>) attributes {dimension_semantics = [#tpu.dimension_semantics<parallel>], iteration_bounds = array<i64: 1>, scalar_prefetch = 0 : i64, scratch_operands = 0 : i64, tpu.core_type = #tpu.core_type<tc>, window_params = [{transform_indices = @transform_0, window_bounds = array<i64: 32, 512>}, {transform_indices = @transform_1, window_bounds = array<i64: 32, 512>}, {transform_indices = @transform_2, window_bounds = array<i64: 32, 512>}, {transform_indices = @transform_3, window_bounds = array<i64: 32, 512>}, {transform_indices = @transform_4, window_bounds = array<i64: 32, 512>}, {transform_indices = @transform_5, window_bounds = array<i64: 32, 512>}, {transform_indices = @transform_6, window_bounds = array<i64: 32, 512>}, {transform_indices = @transform_7, window_bounds = array<i64: 32, 512>}, {transform_indices = @transform_8, window_bounds = array<i64: 32, 512>}, {transform_indices = @transform_9, window_bounds = array<i64: 32, 512>}, {transform_indices = @transform_10, window_bounds = array<i64: 32, 512>}, {transform_indices = @transform_11, window_bounds = array<i64: 1, 9, 512>}]} {
    %c0 = arith.constant 0 : index
    %c0_0 = arith.constant 0 : index
    %0 = vector.load %arg1[%c0, %c0_0] : memref<32x512xf32, #tpu.memory_space<vmem>>, vector<32x512xf32>
    %c0_1 = arith.constant 0 : index
    %c0_2 = arith.constant 0 : index
    %1 = vector.load %arg2[%c0_1, %c0_2] : memref<32x512xbf16, #tpu.memory_space<vmem>>, vector<32x512xbf16>
    %2 = arith.extf %1 : vector<32x512xbf16> to vector<32x512xf32>
    %c0_3 = arith.constant 0 : index
    %c0_4 = arith.constant 0 : index
    %3 = vector.load %arg3[%c0_3, %c0_4] : memref<32x512xbf16, #tpu.memory_space<vmem>>, vector<32x512xbf16>
    %4 = arith.extf %3 : vector<32x512xbf16> to vector<32x512xf32>
    %c0_5 = arith.constant 0 : index
    %c0_6 = arith.constant 0 : index
    %5 = vector.load %arg4[%c0_5, %c0_6] : memref<32x512xf32, #tpu.memory_space<vmem>>, vector<32x512xf32>
    %c0_7 = arith.constant 0 : index
    %c0_8 = arith.constant 0 : index
    %6 = vector.load %arg5[%c0_7, %c0_8] : memref<32x512xbf16, #tpu.memory_space<vmem>>, vector<32x512xbf16>
    %7 = arith.extf %6 : vector<32x512xbf16> to vector<32x512xf32>
    %c0_9 = arith.constant 0 : index
    %c0_10 = arith.constant 0 : index
    %8 = vector.load %arg6[%c0_9, %c0_10] : memref<32x512xbf16, #tpu.memory_space<vmem>>, vector<32x512xbf16>
    %9 = arith.extf %8 : vector<32x512xbf16> to vector<32x512xf32>
    %c0_11 = arith.constant 0 : index
    %c0_12 = arith.constant 0 : index
    %10 = vector.load %arg7[%c0_11, %c0_12] : memref<32x512xf32, #tpu.memory_space<vmem>>, vector<32x512xf32>
    %c0_13 = arith.constant 0 : index
    %c0_14 = arith.constant 0 : index
    %11 = vector.load %arg8[%c0_13, %c0_14] : memref<32x512xf32, #tpu.memory_space<vmem>>, vector<32x512xf32>
    %c0_15 = arith.constant 0 : index
    %c0_16 = arith.constant 0 : index
    %12 = vector.load %arg9[%c0_15, %c0_16] : memref<32x512xf32, #tpu.memory_space<vmem>>, vector<32x512xf32>
    %c0_17 = arith.constant 0 : index
    %c0_18 = arith.constant 0 : index
    %13 = vector.load %arg10[%c0_17, %c0_18] : memref<32x512xf32, #tpu.memory_space<vmem>>, vector<32x512xf32>
    %c32_i32 = arith.constant 32 : i32
    %14 = arith.muli %arg0, %c32_i32 : i32
    %15 = tpu.iota {dimensions = array<i32: 0>} : vector<32x512xi32>
    %16 = vector.broadcast %14 : i32 to vector<32x512xi32>
    %17 = arith.addi %15, %16 : vector<32x512xi32>
    %c10_i32 = arith.constant 10 : i32
    %18 = vector.broadcast %c10_i32 : i32 to vector<32x512xi32>
    %19 = arith.cmpi slt, %17, %18 : vector<32x512xi32>
    %cst = arith.constant 5.000000e-01 : f32
    %20 = vector.broadcast %cst : f32 to vector<32x512xf32>
    %21 = arith.select %19, %0, %20 : vector<32x512xi1>, vector<32x512xf32>
    %cst_19 = arith.constant 0.000000e+00 : f32
    %22 = vector.broadcast %cst_19 : f32 to vector<32x512xf32>
    %23 = arith.select %19, %2, %22 : vector<32x512xi1>, vector<32x512xf32>
    %cst_20 = arith.constant 0.000000e+00 : f32
    %24 = vector.broadcast %cst_20 : f32 to vector<32x512xf32>
    %25 = arith.select %19, %4, %24 : vector<32x512xi1>, vector<32x512xf32>
    %cst_21 = arith.constant 0.000000e+00 : f32
    %26 = vector.broadcast %cst_21 : f32 to vector<32x512xf32>
    %27 = arith.select %19, %5, %26 : vector<32x512xi1>, vector<32x512xf32>
    %cst_22 = arith.constant 0.000000e+00 : f32
    %28 = vector.broadcast %cst_22 : f32 to vector<32x512xf32>
    %29 = arith.select %19, %7, %28 : vector<32x512xi1>, vector<32x512xf32>
    %cst_23 = arith.constant 0.000000e+00 : f32
    %30 = vector.broadcast %cst_23 : f32 to vector<32x512xf32>
    %31 = arith.select %19, %9, %30 : vector<32x512xi1>, vector<32x512xf32>
    %cst_24 = arith.constant 0.000000e+00 : f32
    %32 = vector.broadcast %cst_24 : f32 to vector<32x512xf32>
    %33 = arith.select %19, %10, %32 : vector<32x512xi1>, vector<32x512xf32>
    %cst_25 = arith.constant 0.000000e+00 : f32
    %34 = vector.broadcast %cst_25 : f32 to vector<32x512xf32>
    %35 = arith.select %19, %11, %34 : vector<32x512xi1>, vector<32x512xf32>
    %cst_26 = arith.constant 0.000000e+00 : f32
    %36 = vector.broadcast %cst_26 : f32 to vector<32x512xf32>
    %37 = arith.select %19, %12, %36 : vector<32x512xi1>, vector<32x512xf32>
    %cst_27 = arith.constant 0.000000e+00 : f32
    %38 = vector.broadcast %cst_27 : f32 to vector<32x512xf32>
    %39 = arith.select %19, %13, %38 : vector<32x512xi1>, vector<32x512xf32>
    %40 = arith.mulf %23, %25 : vector<32x512xf32>
    %41 = math.floor %40 : vector<32x512xf32>
    %cst_28 = arith.constant 1.000000e+00 : f32
    %42 = vector.broadcast %cst_28 : f32 to vector<32x512xf32>
    %43 = arith.subf %42, %23 : vector<32x512xf32>
    %44 = arith.mulf %43, %25 : vector<32x512xf32>
    %45 = math.floor %44 : vector<32x512xf32>
    %46 = math.log %21 : vector<32x512xf32>
    %cst_29 = arith.constant -1.000000e+02 : f32
    %47 = vector.broadcast %cst_29 : f32 to vector<32x512xf32>
    %48 = arith.maximumf %46, %47 : vector<32x512xf32>
    %cst_30 = arith.constant 1.000000e+00 : f32
    %49 = vector.broadcast %cst_30 : f32 to vector<32x512xf32>
    %50 = arith.subf %49, %21 : vector<32x512xf32>
    %51 = math.log %50 : vector<32x512xf32>
    %cst_31 = arith.constant -1.000000e+02 : f32
    %52 = vector.broadcast %cst_31 : f32 to vector<32x512xf32>
    %53 = arith.maximumf %51, %52 : vector<32x512xf32>
    %54 = arith.mulf %23, %48 : vector<32x512xf32>
    %cst_32 = arith.constant 1.000000e+00 : f32
    %55 = vector.broadcast %cst_32 : f32 to vector<32x512xf32>
    %56 = arith.subf %55, %23 : vector<32x512xf32>
    %57 = arith.mulf %56, %53 : vector<32x512xf32>
    %58 = arith.addf %54, %57 : vector<32x512xf32>
    %cst_33 = arith.constant 0.000000e+00 : f32
    %59 = vector.broadcast %cst_33 : f32 to vector<32x512xf32>
    %60 = arith.subf %59, %58 : vector<32x512xf32>
    %61 = arith.mulf %60, %41 : vector<32x512xf32>
    %62 = arith.mulf %60, %45 : vector<32x512xf32>
    %c0_34 = arith.constant 0 : index
    %c0_35 = arith.constant 0 : index
    %63 = vector.load %arg11[%c0_34, %c0_35] : memref<32x512xf32, #tpu.memory_space<vmem>>, vector<32x512xf32>
    tpu.vector_store %arg11[%c0_34, %c0_35], %62 {strides = array<i32>} : memref<32x512xf32, #tpu.memory_space<vmem>>, vector<32x512xf32>,
    %cst_36 = arith.constant dense<0.000000e+00> : vector<512xf32>
    %64 = vector.multi_reduction <add>, %61, %cst_36 [0] : vector<32x512xf32> to vector<512xf32>
    %65 = vector.shape_cast %64 : vector<512xf32> to vector<1x512xf32>
    %c0_37 = arith.constant 0 : index
    %c0_38 = arith.constant 0 : index
    %c0_39 = arith.constant 0 : index
    %66 = vector.load %arg12[%c0_37, %c0_38, %c0_39] : memref<1x9x512xf32, #tpu.memory_space<vmem>>, vector<1x1x512xf32>
    %67 = vector.shape_cast %66 : vector<1x1x512xf32> to vector<1x512xf32>
    %68 = vector.shape_cast %65 : vector<1x512xf32> to vector<1x1x512xf32>
    tpu.vector_store %arg12[%c0_37, %c0_38, %c0_39], %68 {strides = array<i32>} : memref<1x9x512xf32, #tpu.memory_space<vmem>>, vector<1x1x512xf32>,
    %cst_40 = arith.constant dense<0.000000e+00> : vector<512xf32>
    %69 = vector.multi_reduction <add>, %41, %cst_40 [0] : vector<32x512xf32> to vector<512xf32>
    %70 = vector.shape_cast %69 : vector<512xf32> to vector<1x512xf32>
    %c0_41 = arith.constant 0 : index
    %c1 = arith.constant 1 : index
    %c0_42 = arith.constant 0 : index
    %71 = vector.load %arg12[%c0_41, %c1, %c0_42] : memref<1x9x512xf32, #tpu.memory_space<vmem>>, vector<1x1x512xf32>
    %72 = vector.shape_cast %71 : vector<1x1x512xf32> to vector<1x512xf32>
    %73 = vector.shape_cast %70 : vector<1x512xf32> to vector<1x1x512xf32>
    tpu.vector_store %arg12[%c0_41, %c1, %c0_42], %73 {strides = array<i32>} : memref<1x9x512xf32, #tpu.memory_space<vmem>>, vector<1x1x512xf32>,
    %cst_43 = arith.constant dense<0.000000e+00> : vector<512xf32>
    %74 = vector.multi_reduction <add>, %45, %cst_43 [0] : vector<32x512xf32> to vector<512xf32>
    %75 = vector.shape_cast %74 : vector<512xf32> to vector<1x512xf32>
    %c0_44 = arith.constant 0 : index
    %c2 = arith.constant 2 : index
    %c0_45 = arith.constant 0 : index
    %76 = vector.load %arg12[%c0_44, %c2, %c0_45] : memref<1x9x512xf32, #tpu.memory_space<vmem>>, vector<1x1x512xf32>
    %77 = vector.shape_cast %76 : vector<1x1x512xf32> to vector<1x512xf32>
    %78 = vector.shape_cast %75 : vector<1x512xf32> to vector<1x1x512xf32>
    tpu.vector_store %arg12[%c0_44, %c2, %c0_45], %78 {strides = array<i32>} : memref<1x9x512xf32, #tpu.memory_space<vmem>>, vector<1x1x512xf32>,
    %79 = arith.mulf %27, %29 : vector<32x512xf32>
    %80 = arith.mulf %79, %31 : vector<32x512xf32>
    %cst_46 = arith.constant dense<0.000000e+00> : vector<512xf32>
    %81 = vector.multi_reduction <add>, %80, %cst_46 [0] : vector<32x512xf32> to vector<512xf32>
    %82 = vector.shape_cast %81 : vector<512xf32> to vector<1x512xf32>
    %c0_47 = arith.constant 0 : index
    %c3 = arith.constant 3 : index
    %c0_48 = arith.constant 0 : index
    %83 = vector.load %arg12[%c0_47, %c3, %c0_48] : memref<1x9x512xf32, #tpu.memory_space<vmem>>, vector<1x1x512xf32>
    %84 = vector.shape_cast %83 : vector<1x1x512xf32> to vector<1x512xf32>
    %85 = vector.shape_cast %82 : vector<1x512xf32> to vector<1x1x512xf32>
    tpu.vector_store %arg12[%c0_47, %c3, %c0_48], %85 {strides = array<i32>} : memref<1x9x512xf32, #tpu.memory_space<vmem>>, vector<1x1x512xf32>,
    %86 = arith.mulf %27, %31 : vector<32x512xf32>
    %cst_49 = arith.constant dense<0.000000e+00> : vector<512xf32>
    %87 = vector.multi_reduction <add>, %86, %cst_49 [0] : vector<32x512xf32> to vector<512xf32>
    %88 = vector.shape_cast %87 : vector<512xf32> to vector<1x512xf32>
    %c0_50 = arith.constant 0 : index
    %c4 = arith.constant 4 : index
    %c0_51 = arith.constant 0 : index
    %89 = vector.load %arg12[%c0_50, %c4, %c0_51] : memref<1x9x512xf32, #tpu.memory_space<vmem>>, vector<1x1x512xf32>
    %90 = vector.shape_cast %89 : vector<1x1x512xf32> to vector<1x512xf32>
    %91 = vector.shape_cast %88 : vector<1x512xf32> to vector<1x1x512xf32>
    tpu.vector_store %arg12[%c0_50, %c4, %c0_51], %91 {strides = array<i32>} : memref<1x9x512xf32, #tpu.memory_space<vmem>>, vector<1x1x512xf32>,
    %92 = arith.mulf %29, %31 : vector<32x512xf32>
    %cst_52 = arith.constant dense<0.000000e+00> : vector<512xf32>
    %93 = vector.multi_reduction <add>, %92, %cst_52 [0] : vector<32x512xf32> to vector<512xf32>
    %94 = vector.shape_cast %93 : vector<512xf32> to vector<1x512xf32>
    %c0_53 = arith.constant 0 : index
    %c5 = arith.constant 5 : index
    %c0_54 = arith.constant 0 : index
    %95 = vector.load %arg12[%c0_53, %c5, %c0_54] : memref<1x9x512xf32, #tpu.memory_space<vmem>>, vector<1x1x512xf32>
    %96 = vector.shape_cast %95 : vector<1x1x512xf32> to vector<1x512xf32>
    %97 = vector.shape_cast %94 : vector<1x512xf32> to vector<1x1x512xf32>
    tpu.vector_store %arg12[%c0_53, %c5, %c0_54], %97 {strides = array<i32>} : memref<1x9x512xf32, #tpu.memory_space<vmem>>, vector<1x1x512xf32>,
    %98 = arith.subf %33, %35 : vector<32x512xf32>
    %99 = math.absf %98 : vector<32x512xf32>
    %100 = arith.mulf %99, %29 : vector<32x512xf32>
    %cst_55 = arith.constant dense<0.000000e+00> : vector<512xf32>
    %101 = vector.multi_reduction <add>, %100, %cst_55 [0] : vector<32x512xf32> to vector<512xf32>
    %102 = vector.shape_cast %101 : vector<512xf32> to vector<1x512xf32>
    %c0_56 = arith.constant 0 : index
    %c6 = arith.constant 6 : index
    %c0_57 = arith.constant 0 : index
    %103 = vector.load %arg12[%c0_56, %c6, %c0_57] : memref<1x9x512xf32, #tpu.memory_space<vmem>>, vector<1x1x512xf32>
    %104 = vector.shape_cast %103 : vector<1x1x512xf32> to vector<1x512xf32>
    %105 = vector.shape_cast %102 : vector<1x512xf32> to vector<1x1x512xf32>
    tpu.vector_store %arg12[%c0_56, %c6, %c0_57], %105 {strides = array<i32>} : memref<1x9x512xf32, #tpu.memory_space<vmem>>, vector<1x1x512xf32>,
    %106 = arith.subf %37, %39 : vector<32x512xf32>
    %107 = math.absf %106 : vector<32x512xf32>
    %108 = arith.mulf %107, %29 : vector<32x512xf32>
    %cst_58 = arith.constant dense<0.000000e+00> : vector<512xf32>
    %109 = vector.multi_reduction <add>, %108, %cst_58 [0] : vector<32x512xf32> to vector<512xf32>
    %110 = vector.shape_cast %109 : vector<512xf32> to vector<1x512xf32>
    %c0_59 = arith.constant 0 : index
    %c7 = arith.constant 7 : index
    %c0_60 = arith.constant 0 : index
    %111 = vector.load %arg12[%c0_59, %c7, %c0_60] : memref<1x9x512xf32, #tpu.memory_space<vmem>>, vector<1x1x512xf32>
    %112 = vector.shape_cast %111 : vector<1x1x512xf32> to vector<1x512xf32>
    %113 = vector.shape_cast %110 : vector<1x512xf32> to vector<1x1x512xf32>
    tpu.vector_store %arg12[%c0_59, %c7, %c0_60], %113 {strides = array<i32>} : memref<1x9x512xf32, #tpu.memory_space<vmem>>, vector<1x1x512xf32>,
    %cst_61 = arith.constant dense<0.000000e+00> : vector<512xf32>
    %114 = vector.multi_reduction <add>, %29, %cst_61 [0] : vector<32x512xf32> to vector<512xf32>
    %115 = vector.shape_cast %114 : vector<512xf32> to vector<1x512xf32>
    %c0_62 = arith.constant 0 : index
    %c8 = arith.constant 8 : index
    %c0_63 = arith.constant 0 : index
    %116 = vector.load %arg12[%c0_62, %c8, %c0_63] : memref<1x9x512xf32, #tpu.memory_space<vmem>>, vector<1x1x512xf32>
    %117 = vector.shape_cast %116 : vector<1x1x512xf32> to vector<1x512xf32>
    %118 = vector.shape_cast %115 : vector<1x512xf32> to vector<1x1x512xf32>
    tpu.vector_store %arg12[%c0_62, %c8, %c0_63], %118 {strides = array<i32>} : memref<1x9x512xf32, #tpu.memory_space<vmem>>, vector<1x1x512xf32>,
    return
  }
  func.func @transform_0(%arg0: i32) -> (i32, i32) {
    %c0_i32 = arith.constant 0 : i32
    %c0_i32_0 = arith.constant 0 : i32
    return %arg0, %c0_i32 : i32, i32
  }
  func.func @transform_1(%arg0: i32) -> (i32, i32) {
    %c0_i32 = arith.constant 0 : i32
    %c0_i32_0 = arith.constant 0 : i32
    return %arg0, %c0_i32 : i32, i32
  }
  func.func @transform_2(%arg0: i32) -> (i32, i32) {
    %c0_i32 = arith.constant 0 : i32
    %c0_i32_0 = arith.constant 0 : i32
    return %arg0, %c0_i32 : i32, i32
  }
  func.func @transform_3(%arg0: i32) -> (i32, i32) {
    %c0_i32 = arith.constant 0 : i32
    %c0_i32_0 = arith.constant 0 : i32
    return %arg0, %c0_i32 : i32, i32
  }
  func.func @transform_4(%arg0: i32) -> (i32, i32) {
    %c0_i32 = arith.constant 0 : i32
    %c0_i32_0 = arith.constant 0 : i32
    return %arg0, %c0_i32 : i32, i32
  }
  func.func @transform_5(%arg0: i32) -> (i32, i32) {
    %c0_i32 = arith.constant 0 : i32
    %c0_i32_0 = arith.constant 0 : i32
    return %arg0, %c0_i32 : i32, i32
  }
  func.func @transform_6(%arg0: i32) -> (i32, i32) {
    %c0_i32 = arith.constant 0 : i32
    %c0_i32_0 = arith.constant 0 : i32
    return %arg0, %c0_i32 : i32, i32
  }
  func.func @transform_7(%arg0: i32) -> (i32, i32) {
    %c0_i32 = arith.constant 0 : i32
    %c0_i32_0 = arith.constant 0 : i32
    return %arg0, %c0_i32 : i32, i32
  }
  func.func @transform_8(%arg0: i32) -> (i32, i32) {
    %c0_i32 = arith.constant 0 : i32
    %c0_i32_0 = arith.constant 0 : i32
    return %arg0, %c0_i32 : i32, i32
  }
  func.func @transform_9(%arg0: i32) -> (i32, i32) {
    %c0_i32 = arith.constant 0 : i32
    %c0_i32_0 = arith.constant 0 : i32
    return %arg0, %c0_i32 : i32, i32
  }
  func.func @transform_10(%arg0: i32) -> (i32, i32) {
    %c0_i32 = arith.constant 0 : i32
    %c0_i32_0 = arith.constant 0 : i32
    return %arg0, %c0_i32 : i32, i32
  }
  func.func @transform_11(%arg0: i32) -> (i32, i32, i32) {
    %c0_i32 = arith.constant 0 : i32
    %c0_i32_0 = arith.constant 0 : i32
    %c0_i32_1 = arith.constant 0 : i32
    return %arg0, %c0_i32, %c0_i32_0 : i32, i32, i32
  }
}

</mosaic_0001>

<bundles_post_ra>
// kernel: tpu_custom_call.1
= control target key start
LH: loop header
LB: loop body
LE: loop exit
PB: predicated region body
PF: predicated region fallthrough
CT: control target
= control target key end

     0   :  { %17 = vsyncpa [#allocation3], 0  ;;  %s2691_s0 = inlined_call_operand.hbm [shape: f32[10,512], index: 0, kind: input, shape index: {}]   ;;  %s2692_s1 = inlined_call_operand.hbm [shape: bf16[10,512], index: 1, kind: input, shape index: {}]   ;;  %s2693_s2 = inlined_call_operand.hbm [shape: bf16[10,512], index: 2, kind: input, shape index: {}]   ;;  %s2694_s3 = inlined_call_operand.hbm [shape: f32[10,512], index: 3, kind: input, shape index: {}]   ;;  %s2695_s4 = inlined_call_operand.hbm [shape: bf16[10,512], index: 4, kind: input, shape index: {}]   ;;  %s2696_s5 = inlined_call_operand.hbm [shape: bf16[10,512], index: 5, kind: input, shape index: {}]   ;;  %s2697_s6 = inlined_call_operand.hbm [shape: f32[10,512], index: 6, kind: input, shape index: {}]   ;;  %s2698_s7 = inlined_call_operand.hbm [shape: f32[10,512], index: 7, kind: input, shape index: {}]   ;;  %s2699_s8 = inlined_call_operand.hbm [shape: f32[10,512], index: 8, kind: input, shape index: {}]   ;;  %s2700_s9 = inlined_call_operand.hbm [shape: f32[10,512], index: 9, kind: input, shape index: {}]   ;;  %s2701_s10 = inlined_call_operand.hbm [shape: f32[10,512], index: 10, kind: output, shape index: {0}]   ;;  %s2702_s11 = inlined_call_operand.vmem [shape: f32[1,9,512], index: 11, kind: output, shape index: {1}]  }
   0x1   :  { %18 = vsyncpa [#allocation6], 0 }
   0x2   :  { %19 = vsyncpa [#allocation9], 0 }
   0x3   :  { %20 = vsyncpa [#allocation12], 0 }
   0x4   :  { %21 = vsyncpa [#allocation15], 0 }
   0x5   :  { %22 = vsyncpa [#allocation18], 0 }
   0x6   :  { %23 = vsyncpa [#allocation4], 0 }
   0x7   :  { %28 = vsyncadd [#allocation3], 1024  ;;  %s1959_s17 = smov [#allocation2]   ;;  %s1703_s21 = scalar_lea.hbm %s2691_s0, 1024 }
   0x8   :  { %s29_s18 = sshll.u32 %s1959_s17, 4  ;;  %p1704_p0 = scmp.ne.s32.totalorder %s2691_s0, %s1703_s21  ;;  %s30_s18 = int_to_ptr.vmem [resolvable:$true] %s29_s18 }
   0x9   :  { %p1707_p1 = scmp.lt.u32.totalorder %s1703_s21, %s2691_s0 }
   0xb   :  { %p1709_p2 = pnand %p1707_p1, %p1704_p0 }
   0xd   :  { %1712 = shalt.err (!%p1709_p2)
}
   0xe   :  { %s1713_s26 = scalar_lea.vmem %s30_s18, 1024  ;;  %s1717_s27 = scalar_lea.vmem %s30_s18, 2048 }
   0xf   :  { %p1714_p3 = scmp.ne.s32.totalorder %s30_s18, %s1713_s26  ;;  %p1718_p4 = scmp.lt.s32.totalorder %s30_s18, %s30_s18 }
  0x10   :  { %p1719_p5 = scmp.lt.s32.totalorder %s1717_s27, %s1713_s26 }
  0x12   :  { %p1720_p6 = por %p1719_p5, %p1718_p4 }
  0x14   :  { %p1721_p7 = pnand %p1720_p6, %p1714_p3 }
  0x16   :  { %1724 = shalt.err (!%p1721_p7)
}
  0x17   :  { %s1960_s28 = smov 512   ;;  %s1961_s29 = smov 32  }
  0x18   :  { %35 = dma.hbm_to_vmem [thread:$0]  %s2691_s0, 1024, %s30_s18, [#allocation3], %s1960_s28, %s1960_s28, %s1961_s29  }
  0x19   :  { %40 = vsyncadd [#allocation6], 512  ;;  %s1962_s13 = smov [#allocation5]   ;;  %s1725_s17 = scalar_lea.hbm %s2692_s1, 512 }
  0x1a   :  { %s41_s14 = sshll.u32 %s1962_s13, 4  ;;  %p1726_p8 = scmp.ne.s32.totalorder %s2692_s1, %s1725_s17  ;;  %s42_s14 = int_to_ptr.vmem [resolvable:$true] %s41_s14 }
  0x1b   :  { %p1729_p9 = scmp.lt.u32.totalorder %s1725_s17, %s2692_s1 }
  0x1d   :  { %p1731_p10 = pnand %p1729_p9, %p1726_p8 }
  0x1f   :  { %1734 = shalt.err (!%p1731_p10)
}
  0x20   :  { %s1735_s23 = scalar_lea.vmem %s42_s14, 512  ;;  %s1739_s0 = scalar_lea.vmem %s42_s14, 1024 }
  0x21   :  { %p1736_p11 = scmp.ne.s32.totalorder %s42_s14, %s1735_s23  ;;  %p1740_p12 = scmp.lt.s32.totalorder %s42_s14, %s42_s14 }
  0x22   :  { %p1741_p13 = scmp.lt.s32.totalorder %s1739_s0, %s1735_s23 }
  0x24   :  { %p1742_p0 = por %p1741_p13, %p1740_p12 }
  0x26   :  { %p1743_p1 = pnand %p1742_p0, %p1736_p11 }
  0x28   :  { %1746 = shalt.err (!%p1743_p1)
}
  0x29   :  { %s1963_s18 = smov 256   ;;  %s1964_s24 = smov 16  }
  0x2a   :  { %47 = dma.hbm_to_vmem [thread:$0]  %s2692_s1, 512, %s42_s14, [#allocation6], %s1963_s18, %s1963_s18, %s1964_s24  }
  0x2b   :  { %52 = vsyncadd [#allocation6], 512  ;;  %s1965_s27 = smov [#allocation7]   ;;  %s1747_s15 = scalar_lea.hbm %s2693_s2, 512 }
  0x2c   :  { %s53_s30 = sshll.u32 %s1965_s27, 4  ;;  %p1748_p2 = scmp.ne.s32.totalorder %s2693_s2, %s1747_s15  ;;  %s54_s30 = int_to_ptr.vmem [resolvable:$true] %s53_s30 }
  0x2d   :  { %p1751_p3 = scmp.lt.u32.totalorder %s1747_s15, %s2693_s2 }
  0x2f   :  { %p1753_p4 = pnand %p1751_p3, %p1748_p2 }
  0x31   :  { %1756 = shalt.err (!%p1753_p4)
}
  0x32   :  { %s1757_s21 = scalar_lea.vmem %s54_s30, 512  ;;  %s1761_s1 = scalar_lea.vmem %s54_s30, 1024 }
  0x33   :  { %p1758_p5 = scmp.ne.s32.totalorder %s54_s30, %s1757_s21  ;;  %p1762_p6 = scmp.lt.s32.totalorder %s54_s30, %s54_s30 }
  0x34   :  { %p1763_p7 = scmp.lt.s32.totalorder %s1761_s1, %s1757_s21 }
  0x36   :  { %p1764_p8 = por %p1763_p7, %p1762_p6 }
  0x38   :  { %p1765_p9 = pnand %p1764_p8, %p1758_p5 }
  0x3a   :  { %1768 = shalt.err (!%p1765_p9)
}
  0x3b   :  { %59 = dma.hbm_to_vmem [thread:$0]  %s2693_s2, 512, %s54_s30, [#allocation6], %s1963_s18, %s1963_s18, %s1964_s24  }
  0x3c   :  { %64 = vsyncadd [#allocation9], 1024  ;;  %s1966_s23 = smov [#allocation8]   ;;  %s1769_s27 = scalar_lea.hbm %s2694_s3, 1024 }
  0x3d   :  { %s65_s0 = sshll.u32 %s1966_s23, 4  ;;  %p1770_p10 = scmp.ne.s32.totalorder %s2694_s3, %s1769_s27  ;;  %s66_s0 = int_to_ptr.vmem [resolvable:$true] %s65_s0 }
  0x3e   :  { %p1773_p11 = scmp.lt.u32.totalorder %s1769_s27, %s2694_s3 }
  0x40   :  { %p1775_p12 = pnand %p1773_p11, %p1770_p10 }
  0x42   :  { %1778 = shalt.err (!%p1775_p12)
}
  0x43   :  { %s1779_s17 = scalar_lea.vmem %s66_s0, 1024  ;;  %s1783_s2 = scalar_lea.vmem %s66_s0, 2048 }
  0x44   :  { %p1780_p13 = scmp.ne.s32.totalorder %s66_s0, %s1779_s17  ;;  %p1784_p0 = scmp.lt.s32.totalorder %s66_s0, %s66_s0 }
  0x45   :  { %p1785_p1 = scmp.lt.s32.totalorder %s1783_s2, %s1779_s17 }
  0x47   :  { %p1786_p2 = por %p1785_p1, %p1784_p0 }
  0x49   :  { %p1787_p3 = pnand %p1786_p2, %p1780_p13 }
  0x4b   :  { %1790 = shalt.err (!%p1787_p3)
}
  0x4c   :  { %71 = dma.hbm_to_vmem [thread:$0]  %s2694_s3, 1024, %s66_s0, [#allocation9], %s1960_s28, %s1960_s28, %s1961_s29  }
  0x4d   :  { %76 = vsyncadd [#allocation9], 512  ;;  %s1967_s20 = smov [#allocation10]   ;;  %s1791_s22 = scalar_lea.hbm %s2695_s4, 512 }
  0x4e   :  { %s77_s21 = sshll.u32 %s1967_s20, 4  ;;  %p1792_p4 = scmp.ne.s32.totalorder %s2695_s4, %s1791_s22  ;;  %s78_s21 = int_to_ptr.vmem [resolvable:$true] %s77_s21 }
  0x4f   :  { %p1795_p5 = scmp.lt.u32.totalorder %s1791_s22, %s2695_s4 }
  0x51   :  { %p1797_p6 = pnand %p1795_p5, %p1792_p4 }
  0x53   :  { %1800 = shalt.err (!%p1797_p6)
}
  0x54   :  { %s1801_s12 = scalar_lea.vmem %s78_s21, 512  ;;  %s1805_s3 = scalar_lea.vmem %s78_s21, 1024 }
  0x55   :  { %p1802_p7 = scmp.ne.s32.totalorder %s78_s21, %s1801_s12  ;;  %p1806_p8 = scmp.lt.s32.totalorder %s78_s21, %s78_s21 }
  0x56   :  { %p1807_p9 = scmp.lt.s32.totalorder %s1805_s3, %s1801_s12 }
  0x58   :  { %p1808_p10 = por %p1807_p9, %p1806_p8 }
  0x5a   :  { %p1809_p11 = pnand %p1808_p10, %p1802_p7 }
  0x5c   :  { %1812 = shalt.err (!%p1809_p11)
}
  0x5d   :  { %83 = dma.hbm_to_vmem [thread:$0]  %s2695_s4, 512, %s78_s21, [#allocation9], %s1963_s18, %s1963_s18, %s1964_s24  }
  0x5e   :  { %88 = vsyncadd [#allocation12], 512  ;;  %s1968_s15 = smov [#allocation11]   ;;  %s1813_s30 = scalar_lea.hbm %s2696_s5, 512 }
  0x5f   :  { %s89_s16 = sshll.u32 %s1968_s15, 4  ;;  %p1814_p12 = scmp.ne.s32.totalorder %s2696_s5, %s1813_s30  ;;  %s90_s16 = int_to_ptr.vmem [resolvable:$true] %s89_s16 }
  0x60   :  { %p1817_p13 = scmp.lt.u32.totalorder %s1813_s30, %s2696_s5 }
  0x62   :  { %p1819_p0 = pnand %p1817_p13, %p1814_p12 }
  0x64   :  { %1822 = shalt.err (!%p1819_p0)
}
  0x65   :  { %s1823_s22 = scalar_lea.vmem %s90_s16, 512  ;;  %s1827_s4 = scalar_lea.vmem %s90_s16, 1024 }
  0x66   :  { %p1824_p1 = scmp.ne.s32.totalorder %s90_s16, %s1823_s22  ;;  %p1828_p2 = scmp.lt.s32.totalorder %s90_s16, %s90_s16 }
  0x67   :  { %p1829_p3 = scmp.lt.s32.totalorder %s1827_s4, %s1823_s22 }
  0x69   :  { %p1830_p4 = por %p1829_p3, %p1828_p2 }
  0x6b   :  { %p1831_p5 = pnand %p1830_p4, %p1824_p1 }
  0x6d   :  { %1834 = shalt.err (!%p1831_p5)
}
  0x6e   :  { %95 = dma.hbm_to_vmem [thread:$0]  %s2696_s5, 512, %s90_s16, [#allocation12], %s1963_s18, %s1963_s18, %s1964_s24  }
  0x6f   :  { %100 = vsyncadd [#allocation12], 1024  ;;  %s1969_s25 = smov [#allocation13]   ;;  %s1835_s3 = scalar_lea.hbm %s2697_s6, 1024 }
  0x70   :  { %s101_s26 = sshll.u32 %s1969_s25, 4  ;;  %p1836_p6 = scmp.ne.s32.totalorder %s2697_s6, %s1835_s3  ;;  %s102_s26 = int_to_ptr.vmem [resolvable:$true] %s101_s26 }
  0x71   :  { %p1839_p7 = scmp.lt.u32.totalorder %s1835_s3, %s2697_s6 }
  0x73   :  { %p1841_p8 = pnand %p1839_p7, %p1836_p6 }
  0x75   :  { %1844 = shalt.err (!%p1841_p8)
}
  0x76   :  { %s1845_s2 = scalar_lea.vmem %s102_s26, 1024  ;;  %s1849_s5 = scalar_lea.vmem %s102_s26, 2048 }
  0x77   :  { %p1846_p9 = scmp.ne.s32.totalorder %s102_s26, %s1845_s2  ;;  %p1850_p10 = scmp.lt.s32.totalorder %s102_s26, %s102_s26 }
  0x78   :  { %p1851_p11 = scmp.lt.s32.totalorder %s1849_s5, %s1845_s2 }
  0x7a   :  { %p1852_p12 = por %p1851_p11, %p1850_p10 }
  0x7c   :  { %p1853_p13 = pnand %p1852_p12, %p1846_p9 }
  0x7e   :  { %1856 = shalt.err (!%p1853_p13)
}
  0x7f   :  { %107 = dma.hbm_to_vmem [thread:$0]  %s2697_s6, 1024, %s102_s26, [#allocation12], %s1960_s28, %s1960_s28, %s1961_s29  }
  0x80   :  { %112 = vsyncadd [#allocation15], 1024  ;;  %s1970_s16 = smov [#allocation14]   ;;  %s1857_s1 = scalar_lea.hbm %s2698_s7, 1024 }
  0x81   :  { %s113_s30 = sshll.u32 %s1970_s16, 4  ;;  %p1858_p0 = scmp.ne.s32.totalorder %s2698_s7, %s1857_s1  ;;  %s114_s30 = int_to_ptr.vmem [resolvable:$true] %s113_s30 }
  0x82   :  { %p1861_p1 = scmp.lt.u32.totalorder %s1857_s1, %s2698_s7 }
  0x84   :  { %p1863_p2 = pnand %p1861_p1, %p1858_p0 }
  0x86   :  { %1866 = shalt.err (!%p1863_p2)
}
  0x87   :  { %s1867_s23 = scalar_lea.vmem %s114_s30, 1024  ;;  %s1871_s6 = scalar_lea.vmem %s114_s30, 2048 }
  0x88   :  { %p1868_p3 = scmp.ne.s32.totalorder %s114_s30, %s1867_s23  ;;  %p1872_p4 = scmp.lt.s32.totalorder %s114_s30, %s114_s30 }
  0x89   :  { %p1873_p5 = scmp.lt.s32.totalorder %s1871_s6, %s1867_s23 }
  0x8b   :  { %p1874_p6 = por %p1873_p5, %p1872_p4 }
  0x8d   :  { %p1875_p7 = pnand %p1874_p6, %p1868_p3 }
  0x8f   :  { %1878 = shalt.err (!%p1875_p7)
}
  0x90   :  { %119 = dma.hbm_to_vmem [thread:$0]  %s2698_s7, 1024, %s114_s30, [#allocation15], %s1960_s28, %s1960_s28, %s1961_s29  }
  0x91   :  { %124 = vsyncadd [#allocation15], 1024  ;;  %s1971_s27 = smov [#allocation16]   ;;  %s1879_s13 = scalar_lea.hbm %s2699_s8, 1024 }
  0x92   :  { %s125_s12 = sshll.u32 %s1971_s27, 4  ;;  %p1880_p8 = scmp.ne.s32.totalorder %s2699_s8, %s1879_s13  ;;  %s126_s12 = int_to_ptr.vmem [resolvable:$true] %s125_s12 }
  0x93   :  { %p1883_p9 = scmp.lt.u32.totalorder %s1879_s13, %s2699_s8 }
  0x95   :  { %p1885_p10 = pnand %p1883_p9, %p1880_p8 }
  0x97   :  { %1888 = shalt.err (!%p1885_p10)
}
  0x98   :  { %s1889_s18 = scalar_lea.vmem %s126_s12, 1024  ;;  %s1893_s7 = scalar_lea.vmem %s126_s12, 2048 }
  0x99   :  { %p1890_p11 = scmp.ne.s32.totalorder %s126_s12, %s1889_s18  ;;  %p1894_p12 = scmp.lt.s32.totalorder %s126_s12, %s126_s12 }
  0x9a   :  { %p1895_p13 = scmp.lt.s32.totalorder %s1893_s7, %s1889_s18 }
  0x9c   :  { %p1896_p0 = por %p1895_p13, %p1894_p12 }
  0x9e   :  { %p1897_p1 = pnand %p1896_p0, %p1890_p11 }
  0xa0   :  { %1900 = shalt.err (!%p1897_p1)
}
  0xa1   :  { %131 = dma.hbm_to_vmem [thread:$0]  %s2699_s8, 1024, %s126_s12, [#allocation15], %s1960_s28, %s1960_s28, %s1961_s29  }
  0xa2   :  { %136 = vsyncadd [#allocation18], 1024  ;;  %s1972_s30 = smov [#allocation17]   ;;  %s1901_s14 = scalar_lea.hbm %s2700_s9, 1024 }
  0xa3   :  { %s137_s19 = sshll.u32 %s1972_s30, 4  ;;  %p1902_p2 = scmp.ne.s32.totalorder %s2700_s9, %s1901_s14  ;;  %s138_s19 = int_to_ptr.vmem [resolvable:$true] %s137_s19 }
  0xa4   :  { %p1905_p3 = scmp.lt.u32.totalorder %s1901_s14, %s2700_s9 }
  0xa6   :  { %p1907_p4 = pnand %p1905_p3, %p1902_p2 }
  0xa8   :  { %1910 = shalt.err (!%p1907_p4)
}
  0xa9   :  { %s1911_s6 = scalar_lea.vmem %s138_s19, 1024  ;;  %s1915_s8 = scalar_lea.vmem %s138_s19, 2048 }
  0xaa   :  { %p1912_p5 = scmp.ne.s32.totalorder %s138_s19, %s1911_s6  ;;  %p1916_p6 = scmp.lt.s32.totalorder %s138_s19, %s138_s19 }
  0xab   :  { %p1917_p7 = scmp.lt.s32.totalorder %s1915_s8, %s1911_s6 }
  0xad   :  { %p1918_p8 = por %p1917_p7, %p1916_p6 }
  0xaf   :  { %p1919_p9 = pnand %p1918_p8, %p1912_p5 }
  0xb1   :  { %1922 = shalt.err (!%p1919_p9)
}
  0xb2   :  { %143 = dma.hbm_to_vmem [thread:$0]  %s2700_s9, 1024, %s138_s19, [#allocation18], %s1960_s28, %s1960_s28, %s1961_s29  }
  0xb3   :  { %1945 = dma.done.wait [#allocation3], 2048  }
  0xb4   :  { %1946 = vsyncadd [#allocation3], 4294965248 }
  0xb5   :  { %1947 = dma.done.wait [#allocation6], 2048  }
  0xb6   :  { %1948 = vsyncadd [#allocation6], 4294965248 }
  0xb7   :  { %1949 = dma.done.wait [#allocation9], 3072  }
  0xb8   :  { %1950 = vsyncadd [#allocation9], 4294964224 }
  0xb9   :  { %1951 = dma.done.wait [#allocation12], 3072  }
  0xba   :  { %1952 = vsyncadd [#allocation12], 4294964224 }
  0xbb   :  { %1953 = dma.done.wait [#allocation15], 4096  }
  0xbc   :  { %1954 = vsyncadd [#allocation15], 4294963200 }
  0xbd   :  { %1955 = dma.done.wait [#allocation18], 2048  }
  0xbe   :  { %1956 = vsyncadd [#allocation18], 4294965248  ;;  %v367_v0 = vlaneseq  ;;  %v1973_v1 = vmov 0.0   ;;  %v1974_v2 = vmov 1966171168   ;;  %v174_v7 = vld [vmem:[#allocation2] sm:$0xff] }
  0xbf   :  { %837 = vst [vmem:[#allocation19 + $0x40] sm:$0xff] %v1973_v1  ;;  %838 = vst [vmem:[#allocation19 + $0x48] sm:$0xff] %v1973_v1  ;;  %v888_v3 = vunpack.c.l.s4 %v1974_v2  ;;  %v190_v8 = vld [vmem:[#allocation5] sm:$0xff]  ;;  %1671 = vlog2.f32 %v174_v7  ;;  %v669_v13 = vsub.f32 1.0, %v174_v7  ;;  %v175_v14 = vld [vmem:[#allocation2 + $0x8] sm:$0xff] }
  0xc0   :  { %839 = vst [vmem:[#allocation19 + $0x50] sm:$0xff] %v1973_v1  ;;  %840 = vst [vmem:[#allocation19 + $0x58] sm:$0xff] %v1973_v1  ;;  %v368_v4 = vshrl.u32 %v367_v0, 7  ;;  %v214_v9 = vld [vmem:[#allocation7] sm:$0xff]  ;;  %v2192_v11 = vunpack.c.l.bf16 %v190_v8  ;;  %v191_v15 = vld [vmem:[#allocation5 + $0x8] sm:$0xff]  ;;  %v2194_v16 = vunpack.c.h.bf16 %v190_v8  ;;  %1673 = vlog2.f32 %v175_v14 }
  0xc1   :  { %841 = vst [vmem:[#allocation19 + $0x60] sm:$0xff] %v1973_v1  ;;  %842 = vst [vmem:[#allocation19 + $0x68] sm:$0xff] %v1973_v1  ;;  %v889_v5 = vunpack.c.0.s8 %v888_v3  ;;  %v222_v12 = vunpack.c.l.bf16 %v214_v9  ;;  %v223_v17 = vunpack.c.h.bf16 %v214_v9  ;;  %v670_v18 = vsub.f32 1.0, %v175_v14  ;;  %v215_v19 = vld [vmem:[#allocation7 + $0x8] sm:$0xff]  ;;  %v176_v22 = vld [vmem:[#allocation2 + $0x10] sm:$0xff] }
  0xc2   :  { %843 = vst [vmem:[#allocation19 + $0x70] sm:$0xff] %v1973_v1  ;;  %844 = vst [vmem:[#allocation19 + $0x78] sm:$0xff] %v1973_v1  ;;  %v2187_v6 = vadd.s32 8, %v368_v4  ;;  %v573_v21 = vsub.f32 1.0, %v2192_v11  ;;  %1675 = vlog2.f32 %v669_v13  ;;  %v2200_v23 = vunpack.c.l.bf16 %v191_v15  ;;  %v177_v30 = vld [vmem:[#allocation2 + $0x18] sm:$0xff]  ;;  %v178_v39 = vld [vmem:[#allocation2 + $0x20] sm:$0xff] }
  0xc3   :  { %v2190_v10 = vsub.s32 %v889_v5, %v368_v4  ;;  %v2197_v20 = vmul.f32 %v222_v12, %v2192_v11  ;;  %v2203_v24 = vmul.f32 %v223_v17, %v2194_v16  ;;  %v574_v25 = vsub.f32 1.0, %v2194_v16  ;;  %v192_v40 = vld [vmem:[#allocation5 + $0x10] sm:$0xff]  ;;  %v179_v2 = vld [vmem:[#allocation2 + $0x28] sm:$0xff] }
  0xc4   :  { %vm378_vm0 = vcmp.lt.s32.totalorder %v2187_v6, 10  ;;  %1677 = vlog2.f32 %v670_v18  ;;  %v224_v26 = vunpack.c.l.bf16 %v215_v19  ;;  %v2209_v28 = vmul.f32 %v573_v21, %v222_v12  ;;  %v216_v41 = vld [vmem:[#allocation7 + $0x10] sm:$0xff] }
  0xc5   :  { %v557_v27 = vfloor.f32 %v2197_v20  ;;  %v575_v29 = vsub.f32 1.0, %v2200_v23  ;;  %1679 = vlog2.f32 %v176_v22  ;;  %v558_v31 = vfloor.f32 %v2203_v24 }
  0xc6   :  { %v2215_v32 = vmul.f32 %v574_v25, %v223_v17  ;;  %v2218_v33 = vmul.f32 %v224_v26, %v2200_v23  ;;  %v671_v34 = vsub.f32 1.0, %v176_v22  ;;  %v605_v35 = vfloor.f32 %v2209_v28 }
  0xc7   :  { %v2223_v36 = vmul.f32 %v575_v29, %v224_v26  ;;  %v2225_v37 = vunpack.c.h.bf16 %v191_v15  ;;  %v225_v38 = vunpack.c.h.bf16 %v215_v19  ;;  %v672_v44 = vsub.f32 1.0, %v177_v30 }
  0xc8   :  { %v606_v42 = vfloor.f32 %v2215_v32  ;;  %v559_v43 = vfloor.f32 %v2218_v33  ;;  %1681 = vlog2.f32 %v671_v34  ;;  %v202_v48 = vunpack.c.l.bf16 %v192_v40 }
  0xc9   :  { %v607_v45 = vfloor.f32 %v2223_v36  ;;  %v2231_v46 = vmul.f32 %v225_v38, %v2225_v37  ;;  %v576_v47 = vsub.f32 1.0, %v2225_v37  ;;  %1683 = vlog2.f32 %v177_v30  ;;  %v1672_v51 = vpop.eup %1671 }
  0xca   :  { %1685 = vlog2.f32 %v672_v44  ;;  %v226_v49 = vunpack.c.l.bf16 %v216_v41  ;;  %v385_v50 = vsel %vm378_vm0, %v178_v39, 0.5  ;;  %v1674_v55 = vpop.eup %1673  ;;  %v622_v56 = vmul.f32 0.6931472, %v1672_v51 }
  0xcb   :  { %v560_v52 = vfloor.f32 %v2231_v46  ;;  %v2239_v53 = vmul.f32 %v576_v47, %v225_v38  ;;  %1687 = vlog2.f32 %v385_v50  ;;  %v673_v54 = vsub.f32 1.0, %v385_v50 }
  0xcc   :  { %v2243_v57 = vsel %vm378_vm0, %v202_v48, 0.0  ;;  %v417_v58 = vsel %vm378_vm0, %v226_v49, 0.0  ;;  %v203_v59 = vunpack.c.h.bf16 %v192_v40  ;;  %v1676_v60 = vpop.eup %1675  ;;  %v624_v61 = vmul.f32 0.6931472, %v1674_v55 }
  0xcd   :  { %v608_v62 = vfloor.f32 %v2239_v53  ;;  %v2249_v63 = vmul.f32 %v417_v58, %v2243_v57  ;;  %v577_v1 = vsub.f32 1.0, %v2243_v57  ;;  %v653_v4 = vmax.f32 %v622_v56, -100.0 }
  0xce   :  { %v1678_v3 = vpop.eup %1677  ;;  %v686_v5 = vmul.f32 0.6931472, %v1676_v60  ;;  %1689 = vlog2.f32 %v673_v54  ;;  %v227_v7 = vunpack.c.h.bf16 %v216_v41  ;;  %v654_v9 = vmax.f32 %v624_v61, -100.0 }
  0xcf   :  { %v1680_v8 = vpop.eup %1679  ;;  %v688_v12 = vmul.f32 0.6931472, %v1678_v3  ;;  %v561_v13 = vfloor.f32 %v2249_v63  ;;  %v2255_v14 = vmul.f32 %v577_v1, %v417_v58  ;;  %v733_v17 = vmul.f32 %v653_v4, %v2192_v11 }
  0xd0   :  { %v717_v15 = vmax.f32 %v686_v5, -100.0  ;;  %v626_v18 = vmul.f32 0.6931472, %v1680_v8  ;;  %v2260_v19 = vsel %vm378_vm0, %v179_v2, 0.5  ;;  %v734_v26 = vmul.f32 %v654_v9, %v2194_v16 }
  0xd1   :  { %v718_v22 = vmax.f32 %v688_v12, -100.0  ;;  %v609_v30 = vfloor.f32 %v2255_v14  ;;  %v916_v34 = vadd.f32 %v561_v13, %v557_v27  ;;  %v2272_v41 = vsel %vm378_vm0, %v203_v59, 0.0 }
  0xd2   :  { %v1682_v38 = vpop.eup %1681  ;;  %v749_v39 = vmul.f32 %v717_v15, %v573_v21  ;;  %v655_v40 = vmax.f32 %v626_v18, -100.0  ;;  %v418_v44 = vsel %vm378_vm0, %v227_v7, 0.0  ;;  %1691 = vlog2.f32 %v2260_v19 }
  0xd3   :  { %v1684_v48 = vpop.eup %1683  ;;  %v750_v49 = vmul.f32 %v718_v22, %v574_v25  ;;  %v690_v50 = vmul.f32 0.6931472, %v1682_v38  ;;  %v919_v51 = vrot.slane %v916_v34, 4  ;;  %v984_v11 = vadd.f32 %v609_v30, %v605_v35 }
  0xd4   :  { %v1686_v21 = vpop.eup %1685  ;;  %v765_v54 = vadd.f32 %v749_v39, %v733_v17  ;;  %v735_v55 = vmul.f32 %v655_v40, %v2200_v23  ;;  %v628_v56 = vmul.f32 0.6931472, %v1684_v48  ;;  %v2284_v58 = vmul.f32 %v418_v44, %v2272_v41 }
  0xd5   :  { %v1688_v59 = vpop.eup %1687  ;;  %v766_v60 = vadd.f32 %v750_v49, %v734_v26  ;;  %v719_v61 = vmax.f32 %v690_v50, -100.0  ;;  %v692_v16 = vmul.f32 0.6931472, %v1686_v21  ;;  %v920_v25 = vadd.f32 %v919_v51, %v916_v34 }
  0xd6   :  { %v781_v2 = vsub.f32 0.0, %v765_v54  ;;  %v656_v3 = vmax.f32 %v628_v56, -100.0  ;;  %v630_v4 = vmul.f32 0.6931472, %v1688_v59  ;;  %v987_v5 = vrot.slane %v984_v11, 4  ;;  %v217_v56 = vld [vmem:[#allocation7 + $0x18] sm:$0xff] }
  0xd7   :  { %v782_v7 = vsub.f32 0.0, %v766_v60  ;;  %v751_v8 = vmul.f32 %v719_v61, %v575_v29  ;;  %v720_v9 = vmax.f32 %v692_v16, -100.0  ;;  %v921_v12 = vrot.slane %v920_v25, 2  ;;  %v180_v61 = vld [vmem:[#allocation2 + $0x30] sm:$0xff] }
  0xd8   :  { %v1690_v15 = vpop.eup %1689  ;;  %v2290_v17 = vmul.f32 %v781_v2, %v557_v27  ;;  %v813_v18 = vmul.f32 %v781_v2, %v605_v35  ;;  %v736_v22 = vmul.f32 %v656_v3, %v2225_v37  ;;  %v657_v26 = vmax.f32 %v630_v4, -100.0 }
  0xd9   :  { %v2297_v34 = vmul.f32 %v782_v7, %v558_v31  ;;  %v814_v23 = vmul.f32 %v782_v7, %v606_v42  ;;  %v767_v29 = vadd.f32 %v751_v8, %v735_v55  ;;  %v752_v38 = vmul.f32 %v720_v9, %v576_v47  ;;  %v193_v47 = vld [vmem:[#allocation5 + $0x18] sm:$0xff] }
  0xda   :  { %829 = vst [vmem:[#allocation19] sm:$0xff] %v813_v18  ;;  %v694_v20 = vmul.f32 0.6931472, %v1690_v15  ;;  %v737_v27 = vmul.f32 %v657_v26, %v2243_v57  ;;  %v2304_v28 = vadd.f32 %v921_v12, %v920_v25  ;;  %v988_v35 = vadd.f32 %v987_v5, %v984_v11 }
  0xdb   :  { %830 = vst [vmem:[#allocation19 + $0x8] sm:$0xff] %v814_v23  ;;  %v783_v39 = vsub.f32 0.0, %v767_v29  ;;  %v768_v40 = vadd.f32 %v752_v38, %v736_v22  ;;  %v562_v48 = vfloor.f32 %v2284_v58  ;;  %v578_v49 = vsub.f32 1.0, %v2272_v41  ;;  %v181_v22 = vld [vmem:[#allocation2 + $0x38] sm:$0xff] }
  0xdc   :  { %v721_v50 = vmax.f32 %v694_v20, -100.0  ;;  %v989_v51 = vrot.slane %v988_v35, 2  ;;  %v674_v37 = vsub.f32 1.0, %v2260_v19  ;;  %v204_v57 = vunpack.c.l.bf16 %v193_v47 }
  0xdd   :  { %v2312_v21 = vmul.f32 %v783_v39, %v559_v43  ;;  %v815_v11 = vmul.f32 %v783_v39, %v607_v45  ;;  %v784_v54 = vsub.f32 0.0, %v768_v40  ;;  %v2318_v55 = vmul.f32 %v578_v49, %v418_v44  ;;  %v1692_v40 = vpop.eup %1691 }
  0xde   :  { %v753_v59 = vmul.f32 %v721_v50, %v577_v1  ;;  %v990_v60 = vadd.f32 %v989_v51, %v988_v35  ;;  %1693 = vlog2.f32 %v674_v37  ;;  %v925_v19 = vadd.f32 %v562_v48, %v558_v31 }
  0xdf   :  { %831 = vst [vmem:[#allocation19 + $0x10] sm:$0xff] %v815_v11  ;;  %v2328_v16 = vmul.f32 %v784_v54, %v560_v52  ;;  %v816_v44 = vmul.f32 %v784_v54, %v608_v62  ;;  %v610_v25 = vfloor.f32 %v2318_v55  ;;  %v228_v4 = vunpack.c.l.bf16 %v217_v56 }
  0xe0   :  { %v769_v1 = vadd.f32 %v753_v59, %v737_v27  ;;  %v991_v2 = vrot.slane %v990_v60, 1  ;;  %v928_v3 = vrot.slane %v925_v19, 4  ;;  %v387_v31 = vsel %vm378_vm0, %v180_v61, 0.5 }
  0xe1   :  { %832 = vst [vmem:[#allocation19 + $0x18] sm:$0xff] %v816_v44  ;;  %v993_v24 = vadd.f32 %v610_v25, %v606_v42  ;;  %v2341_v5 = vsel %vm378_vm0, %v204_v57, 0.0  ;;  %v205_v7 = vunpack.c.h.bf16 %v193_v47  ;;  %v419_v15 = vsel %vm378_vm0, %v228_v4, 0.0 }
  0xe2   :  { %v785_v8 = vsub.f32 0.0, %v769_v1  ;;  %v2343_v9 = vadd.f32 %v991_v2, %v990_v60  ;;  %v929_v12 = vadd.f32 %v928_v3, %v925_v19  ;;  %v2348_v32 = vmul.f32 %v419_v15, %v2341_v5 }
  0xe3   :  { %v996_v18 = vrot.slane %v993_v24, 4  ;;  %v579_v42 = vsub.f32 1.0, %v2341_v5  ;;  %1695 = vlog2.f32 %v387_v31  ;;  %v675_v38 = vsub.f32 1.0, %v387_v31 }
  0xe4   :  { %v801_v26 = vmul.f32 %v785_v8, %v561_v13  ;;  %v817_v23 = vmul.f32 %v785_v8, %v609_v30  ;;  %v930_v29 = vrot.slane %v929_v12, 2  ;;  %v563_v27 = vfloor.f32 %v2348_v32 }
  0xe5   :  { %v997_v20 = vadd.f32 %v996_v18, %v993_v24  ;;  %v2358_v35 = vmul.f32 %v579_v42, %v419_v15  ;;  %v229_v39 = vunpack.c.h.bf16 %v217_v56  ;;  %1697 = vlog2.f32 %v675_v38 }
  0xe6   :  { %833 = vst [vmem:[#allocation19 + $0x20] sm:$0xff] %v817_v23  ;;  %v845_v50 = vadd.f32 %v801_v26, %v2290_v17  ;;  %v2361_v51 = vadd.f32 %v930_v29, %v929_v12  ;;  %v388_v63 = vsel %vm378_vm0, %v181_v22, 0.5  ;;  %v632_v13 = vmul.f32 0.6931472, %v1692_v40 }
  0xe7   :  { %v998_v14 = vrot.slane %v997_v20, 2  ;;  %v611_v30 = vfloor.f32 %v2358_v35  ;;  %v934_v37 = vadd.f32 %v563_v27, %v559_v43  ;;  %v2372_v17 = vsel %vm378_vm0, %v205_v7, 0.0 }
  0xe8   :  { %v1694_v47 = vpop.eup %1693  ;;  %v848_v11 = vrot.slane %v845_v50, 4  ;;  %v420_v54 = vsel %vm378_vm0, %v229_v39, 0.0  ;;  %1699 = vlog2.f32 %v388_v63  ;;  %v658_v56 = vmax.f32 %v632_v13, -100.0 }
  0xe9   :  { %v696_v59 = vmul.f32 0.6931472, %v1694_v47  ;;  %v999_v60 = vadd.f32 %v998_v14, %v997_v20  ;;  %v937_v19 = vrot.slane %v934_v37, 4  ;;  %v1002_v33 = vadd.f32 %v611_v30, %v607_v45 }
  0xea   :  { %v849_v61 = vadd.f32 %v848_v11, %v845_v50  ;;  %v2381_v43 = vmul.f32 %v420_v54, %v2372_v17  ;;  %v580_v44 = vsub.f32 1.0, %v2372_v17  ;;  %v738_v1 = vmul.f32 %v658_v56, %v2272_v41 }
  0xeb   :  { %v722_v57 = vmax.f32 %v696_v59, -100.0  ;;  %v1000_v2 = vrot.slane %v999_v60, 1  ;;  %v938_v3 = vadd.f32 %v937_v19, %v934_v37  ;;  %v1005_v24 = vrot.slane %v1002_v33, 4 }
  0xec   :  { %v850_v4 = vrot.slane %v849_v61, 2  ;;  %v564_v31 = vfloor.f32 %v2381_v43  ;;  %v2388_v36 = vmul.f32 %v580_v44, %v420_v54  ;;  %v676_v15 = vsub.f32 1.0, %v388_v63 }
  0xed   :  { %v1696_v7 = vpop.eup %1695  ;;  %v754_v45 = vmul.f32 %v722_v57, %v578_v49  ;;  %v1001_v8 = vadd.f32 %v1000_v2, %v999_v60  ;;  %v939_v12 = vrot.slane %v938_v3, 2  ;;  %v1006_v26 = vadd.f32 %v1005_v24, %v1002_v33 }
  0xee   :  { %v851_v18 = vadd.f32 %v850_v4, %v849_v61  ;;  %v634_v22 = vmul.f32 0.6931472, %v1696_v7  ;;  %v612_v23 = vfloor.f32 %v2388_v36  ;;  %1701 = vlog2.f32 %v676_v15  ;;  %v254_v4 = vld [vmem:[#allocation10] sm:$0xff] }
  0xef   :  { %v770_v29 = vadd.f32 %v754_v45, %v738_v1  ;;  %v940_v38 = vadd.f32 %v939_v12, %v938_v3  ;;  %v943_v20 = vadd.f32 %v564_v31, %v560_v52  ;;  %v1698_v39 = vpop.eup %1697  ;;  %v1007_v49 = vrot.slane %v1006_v26, 2 }
  0xf0   :  { %v852_v40 = vrot.slane %v851_v18, 1  ;;  %v659_v41 = vmax.f32 %v634_v22, -100.0  ;;  %v1011_v50 = vadd.f32 %v612_v23, %v608_v62  ;;  %v698_v13 = vmul.f32 0.6931472, %v1698_v39 }
  0xf1   :  { %v786_v63 = vsub.f32 0.0, %v770_v29  ;;  %v946_v14 = vrot.slane %v943_v20, 4  ;;  %v923_v37 = vrot.slane %v2304_v28, 1  ;;  %v1008_v11 = vadd.f32 %v1007_v49, %v1006_v26  ;;  %v255_v49 = vld [vmem:[#allocation10 + $0x8] sm:$0xff] }
  0xf2   :  { %v1700_v47 = vpop.eup %1699  ;;  %v739_v46 = vmul.f32 %v659_v41, %v2341_v5  ;;  %v1014_v54 = vrot.slane %v1011_v50, 4  ;;  %v2403_v52 = vadd.f32 %v852_v40, %v851_v18  ;;  %v723_v59 = vmax.f32 %v698_v13, -100.0 }
  0xf3   :  { %v802_v56 = vmul.f32 %v786_v63, %v562_v48  ;;  %v818_v53 = vmul.f32 %v786_v63, %v610_v25  ;;  %v636_v62 = vmul.f32 0.6931472, %v1700_v47  ;;  %v1009_v60 = vrot.slane %v1008_v11, 1  ;;  %v2430_v63 = vld [vmem:[#allocation10 + $0x10] sm:$0xff]  ;;  %v2432_v47 = vld [vmem:[#allocation10 + $0x18] sm:$0xff] }
  0xf4   :  { %v947_v19 = vadd.f32 %v946_v14, %v943_v20  ;;  %v1015_v61 = vadd.f32 %v1014_v54, %v1011_v50  ;;  %v924_v33 = vadd.f32 %v923_v37, %v2304_v28  ;;  %v755_v1 = vmul.f32 %v723_v59, %v579_v42 }
  0xf5   :  { %834 = vst [vmem:[#allocation19 + $0x28] sm:$0xff] %v818_v53  ;;  %v854_v57 = vadd.f32 %v802_v56, %v2297_v34  ;;  %v660_v2 = vmax.f32 %v636_v62, -100.0  ;;  %v932_v58 = vrot.slane %v2361_v51, 1  ;;  %v1010_v48 = vadd.f32 %v1009_v60, %v1008_v11  ;;  %v278_v53 = vld [vmem:[#allocation11] sm:$0xff] }
  0xf6   :  { %v948_v3 = vrot.slane %v947_v19, 2  ;;  %v1016_v55 = vrot.slane %v1015_v61, 2  ;;  %v941_v25 = vrot.slane %v940_v38, 1  ;;  %v771_v7 = vadd.f32 %v755_v1, %v739_v46 }
  0xf7   :  { %v857_v24 = vrot.slane %v854_v57, 4  ;;  %v740_v45 = vmul.f32 %v660_v2, %v2372_v17  ;;  %v933_v28 = vadd.f32 %v932_v58, %v2361_v51  ;;  %v1024_v5 = vcombine.low %v2343_v9, %v1001_v8 }
  0xf8   :  { %v949_v12 = vadd.f32 %v948_v3, %v947_v19  ;;  %v1017_v15 = vadd.f32 %v1016_v55, %v1015_v61  ;;  %v942_v34 = vadd.f32 %v941_v25, %v940_v38  ;;  %v1702_v42 = vpop.eup %1701  ;;  %v787_v22 = vsub.f32 0.0, %v771_v7  ;;  %v279_v61 = vld [vmem:[#allocation11 + $0x8] sm:$0xff] }
  0xf9   :  { %v858_v18 = vadd.f32 %v857_v24, %v854_v57  ;;  %v956_v26 = vcombine.low %v924_v33, %v933_v28  ;;  %v2417_v29 = vunpack.c.l.bf16 %v254_v4  ;;  %v700_v20 = vmul.f32 0.6931472, %v1702_v42  ;;  %v242_v28 = vld [vmem:[#allocation8 + $0x20] sm:$0xff] }
  0xfa   :  { %v1018_v39 = vrot.slane %v1017_v15, 1  ;;  %v950_v40 = vrot.slane %v949_v12, 1  ;;  %v1032_v41 = vrot.slane %v1024_v5, %v2190_v10  ;;  %v803_v51 = vmul.f32 %v787_v22, %v563_v27 }
  0xfb   :  { %v859_v50 = vrot.slane %v858_v18, 2  ;;  %v819_v38 = vmul.f32 %v787_v22, %v611_v30  ;;  %vm2425_vm1 = vcmp.lt.s32.totalorder %v367_v0, 512  ;;  %v964_v8 = vrot.slane %v956_v26, %v2190_v10  ;;  %v244_v26 = vld [vmem:[#allocation8 + $0x30] sm:$0xff] }
  0xfc   :  { %v724_v13 = vmax.f32 %v700_v20, -100.0  ;;  %v1019_v14 = vadd.f32 %v1018_v39, %v1017_v15  ;;  %v951_v37 = vadd.f32 %v950_v40, %v949_v12  ;;  %v2434_v46 = vunpack.c.h.bf16 %v254_v4  ;;  %v281_v4 = vld [vmem:[#allocation11 + $0x18] sm:$0xff]  ;;  %v243_v12 = vld [vmem:[#allocation8 + $0x28] sm:$0xff] }
  0xfd   :  { %v860_v32 = vadd.f32 %v859_v50, %v858_v18  ;;  %835 = vst [vmem:[#allocation19 + $0x30] sm:$0xff] %v819_v38  ;;  %v863_v27 = vadd.f32 %v803_v51, %v2312_v21  ;;  %v2437_v35 = vunpack.c.l.bf16 %v255_v49  ;;  %v2439_v0 = vunpack.c.h.bf16 %v255_v49  ;;  %v245_v20 = vld [vmem:[#allocation8 + $0x38] sm:$0xff]  ;;  %v239_v50 = vld [vmem:[#allocation8 + $0x8] sm:$0xff] }
  0xfe   :  { %v756_v30 = vmul.f32 %v724_v13, %v580_v44  ;;  %v957_v11 = vcombine.low %v942_v34, %v951_v37  ;;  %v1025_v54 = vcombine.low %v1010_v48, %v1019_v14  ;;  %v266_v56 = vunpack.c.l.bf16 %v2430_v63  ;;  %v280_v44 = vld [vmem:[#allocation11 + $0x10] sm:$0xff]  ;;  %v241_v14 = vld [vmem:[#allocation8 + $0x18] sm:$0xff] }
  0xff   :  { %v861_v59 = vrot.slane %v860_v32, 1  ;;  %v866_v62 = vrot.slane %v863_v27, 4  ;;  %v267_v60 = vunpack.c.h.bf16 %v2430_v63  ;;  %v268_v19 = vunpack.c.l.bf16 %v2432_v47  ;;  %v240_v13 = vld [vmem:[#allocation8 + $0x10] sm:$0xff] }
 0x100   :  { %v772_v21 = vadd.f32 %v756_v30, %v740_v45  ;;  %v971_v33 = vrot.slane %v957_v11, %v2190_v10  ;;  %v1039_v57 = vrot.slane %v1025_v54, %v2190_v10  ;;  %v269_v17 = vunpack.c.h.bf16 %v2432_v47 }
 0x101   :  { %v867_v1 = vadd.f32 %v866_v62, %v863_v27  ;;  %v862_v2 = vadd.f32 %v861_v59, %v860_v32  ;;  %v2449_v58 = vunpack.c.l.bf16 %v278_v53  ;;  %v2451_v48 = vunpack.c.h.bf16 %v278_v53 }
 0x102   :  { %v788_v3 = vsub.f32 0.0, %v772_v21  ;;  %v972_v55 = vcombine.low %v964_v8, %v971_v33  ;;  %v1040_v25 = vcombine.low %v1032_v41, %v1039_v57  ;;  %v2453_v24 = vunpack.c.l.bf16 %v279_v61 }
 0x103   :  { %v868_v7 = vrot.slane %v867_v1, 2  ;;  %v885_v45 = vcombine.low %v2403_v52, %v862_v2  ;;  %v2456_v15 = vunpack.c.h.bf16 %v279_v61  ;;  %v290_v34 = vunpack.c.l.bf16 %v280_v44 }
 0x104   :  { %v804_v5 = vmul.f32 %v788_v3, %v564_v31  ;;  %v820_v42 = vmul.f32 %v788_v3, %v612_v23  ;;  %v979_v18 = vrot.slane %v972_v55, %v2190_v10  ;;  %v1047_v22 = vrot.slane %v1040_v25, %v2190_v10  ;;  %v238_v23 = vld [vmem:[#allocation8] sm:$0xff] }
 0x105   :  { %v869_v39 = vadd.f32 %v868_v7, %v867_v1  ;;  %v2465_v52 = vrot.slane %v885_v45, %v2190_v10  ;;  %v291_v40 = vunpack.c.h.bf16 %v280_v44  ;;  %v292_v41 = vunpack.c.l.bf16 %v281_v4 }
 0x106   :  { %836 = vst [vmem:[#allocation19 + $0x38] sm:$0xff] %v820_v42  ;;  %v872_v49 = vadd.f32 %v804_v5, %v2328_v16  ;;  %1646 = vst.msk [vmem:[%s2702_s11 + $0x1] ss:$8 sm:$0xf] %vm2425_vm1, %v979_v18  ;;  %v293_v43 = vunpack.c.h.bf16 %v281_v4  ;;  %v433_v31 = vsel %vm378_vm0, %v242_v28, 0.0  ;;  %v434_v36 = vsel %vm378_vm0, %v243_v12, 0.0 }
 0x107   :  { %1647 = vst.msk [vmem:[%s2702_s11 + $0x2] ss:$8 sm:$0xf] %vm2425_vm1, %v1047_v22  ;;  %v870_v16 = vrot.slane %v869_v39, 1  ;;  %v435_v51 = vsel %vm378_vm0, %v244_v26, 0.0  ;;  %v436_v38 = vsel %vm378_vm0, %v245_v20, 0.0  ;;  %v1052_v59 = vmul.f32 %v2417_v29, %v238_v23 }
 0x108   :  { %v2488_v8 = vsel %vm378_vm0, %v266_v56, 0.0  ;;  %v875_v63 = vrot.slane %v872_v49, 4  ;;  %v2492_v37 = vsel %vm378_vm0, %v267_v60, 0.0  ;;  %v2496_v47 = vsel %vm378_vm0, %v268_v19, 0.0 }
 0x109   :  { %v2500_v32 = vsel %vm378_vm0, %v269_v17, 0.0  ;;  %v871_v27 = vadd.f32 %v870_v16, %v869_v39  ;;  %v2504_v30 = vsel %vm378_vm0, %v290_v34, 0.0  ;;  %v2508_v11 = vsel %vm378_vm0, %v291_v40, 0.0 }
 0x10a   :  { %v2512_v54 = vsel %vm378_vm0, %v292_v41, 0.0  ;;  %v876_v56 = vadd.f32 %v875_v63, %v872_v49  ;;  %v2516_v53 = vsel %vm378_vm0, %v293_v43, 0.0  ;;  %v1053_v62 = vmul.f32 %v2434_v46, %v239_v50 }
 0x10b   :  { %v1054_v60 = vmul.f32 %v2437_v35, %v240_v13  ;;  %v1055_v19 = vmul.f32 %v2439_v0, %v241_v14  ;;  %v1056_v61 = vmul.f32 %v2488_v8, %v433_v31  ;;  %v1057_v21 = vmul.f32 %v2492_v37, %v434_v36 }
 0x10c   :  { %v877_v33 = vrot.slane %v876_v56, 2  ;;  %v1058_v57 = vmul.f32 %v2496_v47, %v435_v51  ;;  %v1059_v17 = vmul.f32 %v2500_v32, %v436_v38  ;;  %v1068_v44 = vmul.f32 %v1052_v59, %v2449_v58 }
 0x10d   :  { %v1069_v1 = vmul.f32 %v1053_v62, %v2451_v48  ;;  %v1070_v2 = vmul.f32 %v1054_v60, %v2453_v24  ;;  %v1071_v3 = vmul.f32 %v1055_v19, %v2456_v15  ;;  %v1072_v55 = vmul.f32 %v1056_v61, %v2504_v30 }
 0x10e   :  { %v878_v25 = vadd.f32 %v877_v33, %v876_v56  ;;  %v1073_v4 = vmul.f32 %v1057_v21, %v2508_v11  ;;  %v1074_v7 = vmul.f32 %v1058_v57, %v2512_v54  ;;  %v1075_v45 = vmul.f32 %v1059_v17, %v2516_v53 }
 0x10f   :  { %v1084_v28 = vadd.f32 %v1072_v55, %v1068_v44  ;;  %v1152_v12 = vmul.f32 %v2449_v58, %v238_v23  ;;  %v1153_v34 = vmul.f32 %v2451_v48, %v239_v50  ;;  %v1154_v5 = vmul.f32 %v2453_v24, %v240_v13 }
 0x110   :  { %v879_v42 = vrot.slane %v878_v25, 1  ;;  %v1093_v18 = vadd.f32 %v1073_v4, %v1069_v1  ;;  %v1102_v22 = vadd.f32 %v1074_v7, %v1070_v2  ;;  %v1111_v26 = vadd.f32 %v1075_v45, %v1071_v3 }
 0x111   :  { %v1087_v20 = vrot.slane %v1084_v28, 4  ;;  %v1155_v39 = vmul.f32 %v2456_v15, %v241_v14  ;;  %v1156_v40 = vmul.f32 %v2504_v30, %v433_v31  ;;  %v1157_v41 = vmul.f32 %v2508_v11, %v434_v36 }
 0x112   :  { %v880_v49 = vadd.f32 %v879_v42, %v878_v25  ;;  %v1096_v43 = vrot.slane %v1093_v18, 4  ;;  %v1105_v16 = vrot.slane %v1102_v22, 4  ;;  %v1114_v63 = vrot.slane %v1111_v26, 4 }
 0x113   :  { %v1088_v23 = vadd.f32 %v1087_v20, %v1084_v28  ;;  %v1158_v50 = vmul.f32 %v2512_v54, %v435_v51  ;;  %v1159_v13 = vmul.f32 %v2516_v53, %v436_v38  ;;  %v1168_v56 = vadd.f32 %v1156_v40, %v1152_v12 }
 0x114   :  { %v886_v59 = vcombine.low %v871_v27, %v880_v49  ;;  %v1097_v62 = vadd.f32 %v1096_v43, %v1093_v18  ;;  %v1106_v60 = vadd.f32 %v1105_v16, %v1102_v22  ;;  %v1115_v19 = vadd.f32 %v1114_v63, %v1111_v26 }
 0x115   :  { %v1089_v61 = vrot.slane %v1088_v23, 2  ;;  %v1171_v14 = vrot.slane %v1168_v56, 4  ;;  %v1177_v21 = vadd.f32 %v1157_v41, %v1153_v34  ;;  %v1186_v31 = vadd.f32 %v1158_v50, %v1154_v5 }
 0x116   :  { %v900_v36 = vrot.slane %v886_v59, %v2190_v10  ;;  %v1098_v33 = vrot.slane %v1097_v62, 2  ;;  %v1107_v57 = vrot.slane %v1106_v60, 2  ;;  %v1116_v17 = vrot.slane %v1115_v19, 2 }
 0x117   :  { %v1090_v44 = vadd.f32 %v1089_v61, %v1088_v23  ;;  %v1172_v1 = vadd.f32 %v1171_v14, %v1168_v56  ;;  %v1180_v2 = vrot.slane %v1177_v21, 4  ;;  %v1189_v51 = vrot.slane %v1186_v31, 4 }
 0x118   :  { %v901_v38 = vcombine.low %v2465_v52, %v900_v36  ;;  %v1099_v3 = vadd.f32 %v1098_v33, %v1097_v62  ;;  %v1108_v27 = vadd.f32 %v1107_v57, %v1106_v60  ;;  %v1117_v55 = vadd.f32 %v1116_v17, %v1115_v19 }
 0x119   :  { %v1091_v25 = vrot.slane %v1090_v44, 1  ;;  %v1173_v4 = vrot.slane %v1172_v1, 2  ;;  %v1181_v7 = vadd.f32 %v1180_v2, %v1177_v21  ;;  %v1190_v45 = vadd.f32 %v1189_v51, %v1186_v31  ;;  %v306_v21 = vld [vmem:[#allocation13 + $0x20] sm:$0xff] }
 0x11a   :  { %v908_v28 = vrot.slane %v901_v38, %v2190_v10  ;;  %v1100_v12 = vrot.slane %v1099_v3, 1  ;;  %v1109_v34 = vrot.slane %v1108_v27, 1  ;;  %v1118_v5 = vrot.slane %v1117_v55, 1  ;;  %v308_v38 = vld [vmem:[#allocation13 + $0x30] sm:$0xff] }
 0x11b   :  { %v1092_v42 = vadd.f32 %v1091_v25, %v1090_v44  ;;  %v1174_v18 = vadd.f32 %v1173_v4, %v1172_v1  ;;  %v1182_v22 = vrot.slane %v1181_v7, 2  ;;  %v1191_v26 = vrot.slane %v1190_v45, 2  ;;  %v307_v1 = vld [vmem:[#allocation13 + $0x28] sm:$0xff]  ;;  %v309_v25 = vld [vmem:[#allocation13 + $0x38] sm:$0xff]  ;;  %v322_v4 = vld [vmem:[#allocation14 + $0x20] sm:$0xff] }
 0x11c   :  { %914 = vst.msk [vmem:[%s2702_s11] ss:$8 sm:$0xf] %vm2425_vm1, %v908_v28  ;;  %v1101_v52 = vadd.f32 %v1100_v12, %v1099_v3  ;;  %v1110_v20 = vadd.f32 %v1109_v34, %v1108_v27  ;;  %v1119_v40 = vadd.f32 %v1118_v5, %v1117_v55  ;;  %v1195_v41 = vadd.f32 %v1159_v13, %v1155_v39 }
 0x11d   :  { %v1175_v49 = vrot.slane %v1174_v18, 1  ;;  %v1183_v43 = vadd.f32 %v1182_v22, %v1181_v7  ;;  %v1192_v16 = vadd.f32 %v1191_v26, %v1190_v45  ;;  %v1236_v63 = vmul.f32 %v2449_v58, %v2417_v29  ;;  %v323_v45 = vld [vmem:[#allocation14 + $0x28] sm:$0xff] }
 0x11e   :  { %v1124_v23 = vcombine.low %v1092_v42, %v1101_v52  ;;  %v1125_v50 = vcombine.low %v1110_v20, %v1119_v40  ;;  %v1198_v56 = vrot.slane %v1195_v41, 4  ;;  %v1237_v59 = vmul.f32 %v2451_v48, %v2434_v46  ;;  %v324_v42 = vld [vmem:[#allocation14 + $0x30] sm:$0xff]  ;;  %v302_v20 = vld [vmem:[#allocation13] sm:$0xff]  ;;  %v303_v40 = vld [vmem:[#allocation13 + $0x8] sm:$0xff] }
 0x11f   :  { %v1176_v62 = vadd.f32 %v1175_v49, %v1174_v18  ;;  %v1184_v60 = vrot.slane %v1183_v43, 1  ;;  %v1193_v19 = vrot.slane %v1192_v16, 1  ;;  %v1238_v61 = vmul.f32 %v2453_v24, %v2437_v35  ;;  %v325_v18 = vld [vmem:[#allocation14 + $0x38] sm:$0xff] }
 0x120   :  { %v1132_v39 = vrot.slane %v1124_v23, %v2190_v10  ;;  %v1139_v13 = vrot.slane %v1125_v50, %v2190_v10  ;;  %v1199_v14 = vadd.f32 %v1198_v56, %v1195_v41  ;;  %v1239_v58 = vmul.f32 %v2456_v15, %v2439_v0  ;;  %v318_v41 = vld [vmem:[#allocation14] sm:$0xff]  ;;  %v304_v50 = vld [vmem:[#allocation13 + $0x10] sm:$0xff]  ;;  %v319_v56 = vld [vmem:[#allocation14 + $0x8] sm:$0xff] }
 0x121   :  { %v1185_v31 = vadd.f32 %v1184_v60, %v1183_v43  ;;  %v1194_v36 = vadd.f32 %v1193_v19, %v1192_v16  ;;  %v1240_v48 = vmul.f32 %v2504_v30, %v2488_v8  ;;  %v1241_v33 = vmul.f32 %v2508_v11, %v2492_v37 }
 0x122   :  { %v1140_v57 = vcombine.low %v1132_v39, %v1139_v13  ;;  %v1200_v17 = vrot.slane %v1199_v14, 2  ;;  %v1242_v24 = vmul.f32 %v2512_v54, %v2496_v47  ;;  %v1243_v44 = vmul.f32 %v2516_v53, %v2500_v32  ;;  %v321_v39 = vld [vmem:[#allocation14 + $0x18] sm:$0xff] }
 0x123   :  { %v1208_v2 = vcombine.low %v1176_v62, %v1185_v31  ;;  %v1252_v15 = vadd.f32 %v1240_v48, %v1236_v63  ;;  %v1261_v51 = vadd.f32 %v1241_v33, %v1237_v59  ;;  %v2570_v3 = vsel %vm378_vm0, %v306_v21, 0.0  ;;  %v320_v59 = vld [vmem:[#allocation14 + $0x10] sm:$0xff] }
 0x124   :  { %v1147_v30 = vrot.slane %v1140_v57, %v2190_v10  ;;  %v1201_v11 = vadd.f32 %v1200_v17, %v1199_v14  ;;  %v1270_v27 = vadd.f32 %v1242_v24, %v1238_v61  ;;  %v1279_v55 = vadd.f32 %v1243_v44, %v1239_v58  ;;  %v305_v61 = vld [vmem:[#allocation13 + $0x18] sm:$0xff] }
 0x125   :  { %v1216_v54 = vrot.slane %v1208_v2, %v2190_v10  ;;  %v1255_v7 = vrot.slane %v1252_v15, 4  ;;  %v1264_v53 = vrot.slane %v1261_v51, 4  ;;  %v2576_v28 = vsel %vm378_vm0, %v307_v1, 0.0 }
 0x126   :  { %1648 = vst.msk [vmem:[%s2702_s11 + $0x3] ss:$8 sm:$0xf] %vm2425_vm1, %v1147_v30  ;;  %v1202_v12 = vrot.slane %v1201_v11, 1  ;;  %v1273_v34 = vrot.slane %v1270_v27, 4  ;;  %v1282_v5 = vrot.slane %v1279_v55, 4  ;;  %v1320_v48 = vsub.f32 %v302_v20, %v318_v41 }
 0x127   :  { %v483_v22 = vsel %vm378_vm0, %v308_v38, 0.0  ;;  %v1256_v26 = vadd.f32 %v1255_v7, %v1252_v15  ;;  %v1265_v52 = vadd.f32 %v1264_v53, %v1261_v51  ;;  %v484_v49 = vsel %vm378_vm0, %v309_v25, 0.0 }
 0x128   :  { %v497_v43 = vsel %vm378_vm0, %v322_v4, 0.0  ;;  %v1203_v16 = vadd.f32 %v1202_v12, %v1201_v11  ;;  %v1274_v63 = vadd.f32 %v1273_v34, %v1270_v27  ;;  %v1283_v23 = vadd.f32 %v1282_v5, %v1279_v55 }
 0x129   :  { %v498_v62 = vsel %vm378_vm0, %v323_v45, 0.0  ;;  %v1257_v60 = vrot.slane %v1256_v26, 2  ;;  %v1266_v19 = vrot.slane %v1265_v52, 2  ;;  %v499_v13 = vsel %vm378_vm0, %v324_v42, 0.0 }
 0x12a   :  { %v500_v14 = vsel %vm378_vm0, %v325_v18, 0.0  ;;  %v1209_v58 = vcombine.low %v1194_v36, %v1203_v16  ;;  %v1275_v21 = vrot.slane %v1274_v63, 2  ;;  %v1284_v31 = vrot.slane %v1283_v23, 2  ;;  %v338_v18 = vld [vmem:[#allocation16 + $0x20] sm:$0xff] }
 0x12b   :  { %v1258_v33 = vadd.f32 %v1257_v60, %v1256_v26  ;;  %v1267_v57 = vadd.f32 %v1266_v19, %v1265_v52  ;;  %v1321_v17 = vsub.f32 %v303_v40, %v319_v56  ;;  %v1322_v24 = vsub.f32 %v304_v50, %v320_v59  ;;  %v339_v26 = vld [vmem:[#allocation16 + $0x28] sm:$0xff]  ;;  %v341_v60 = vld [vmem:[#allocation16 + $0x38] sm:$0xff]  ;;  %v354_v19 = vld [vmem:[#allocation17 + $0x20] sm:$0xff] }
 0x12c   :  { %v1223_v44 = vrot.slane %v1209_v58, %v2190_v10  ;;  %v1276_v1 = vadd.f32 %v1275_v21, %v1274_v63  ;;  %v1285_v2 = vadd.f32 %v1284_v31, %v1283_v23  ;;  %v1323_v15 = vsub.f32 %v305_v61, %v321_v39  ;;  %v340_v23 = vld [vmem:[#allocation16 + $0x30] sm:$0xff] }
 0x12d   :  { %v1259_v51 = vrot.slane %v1258_v33, 1  ;;  %v1268_v38 = vrot.slane %v1267_v57, 1  ;;  %v1324_v30 = vsub.f32 %v2570_v3, %v497_v43  ;;  %v1325_v11 = vsub.f32 %v2576_v28, %v498_v62 }
 0x12e   :  { %v1224_v27 = vcombine.low %v1216_v54, %v1223_v44  ;;  %v1277_v36 = vrot.slane %v1276_v1, 1  ;;  %v1286_v55 = vrot.slane %v1285_v2, 1  ;;  %v1326_v25 = vsub.f32 %v483_v22, %v499_v13  ;;  %v334_v13 = vld [vmem:[#allocation16] sm:$0xff] }
 0x12f   :  { %v1260_v4 = vadd.f32 %v1259_v51, %v1258_v33  ;;  %v1269_v7 = vadd.f32 %v1268_v38, %v1267_v57  ;;  %v1327_v53 = vsub.f32 %v484_v49, %v500_v14  ;;  %v1336_v45 = vand.u32 2147483647, %v1320_v48  ;;  %v355_v14 = vld [vmem:[#allocation17 + $0x28] sm:$0xff]  ;;  %v350_v51 = vld [vmem:[#allocation17] sm:$0xff] }
 0x130   :  { %v1231_v12 = vrot.slane %v1224_v27, %v2190_v10  ;;  %v1278_v34 = vadd.f32 %v1277_v36, %v1276_v1  ;;  %v1287_v5 = vadd.f32 %v1286_v55, %v1285_v2  ;;  %v1337_v42 = vand.u32 2147483647, %v1321_v17  ;;  %v335_v57 = vld [vmem:[#allocation16 + $0x8] sm:$0xff]  ;;  %v356_v17 = vld [vmem:[#allocation17 + $0x30] sm:$0xff] }
 0x131   :  { %v1292_v52 = vcombine.low %v1260_v4, %v1269_v7  ;;  %v1338_v20 = vand.u32 2147483647, %v1322_v24  ;;  %v1339_v3 = vand.u32 2147483647, %v1323_v15  ;;  %v1340_v40 = vand.u32 2147483647, %v1324_v30 }
 0x132   :  { %1649 = vst.msk [vmem:[%s2702_s11 + $0x4] ss:$8 sm:$0xf] %vm2425_vm1, %v1231_v12  ;;  %v1293_v54 = vcombine.low %v1278_v34, %v1287_v5  ;;  %v1341_v28 = vand.u32 2147483647, %v1325_v11  ;;  %v1352_v43 = vmul.f32 %v1336_v45, %v2417_v29  ;;  %v1353_v16 = vmul.f32 %v1337_v42, %v2434_v46  ;;  %v357_v24 = vld [vmem:[#allocation17 + $0x38] sm:$0xff] }
 0x133   :  { %v1342_v22 = vand.u32 2147483647, %v1326_v25  ;;  %v1343_v41 = vand.u32 2147483647, %v1327_v53  ;;  %v1300_v49 = vrot.slane %v1292_v52, %v2190_v10  ;;  %v1354_v63 = vmul.f32 %v1338_v20, %v2437_v35  ;;  %v336_v15 = vld [vmem:[#allocation16 + $0x10] sm:$0xff]  ;;  %v351_v38 = vld [vmem:[#allocation17 + $0x8] sm:$0xff] }
 0x134   :  { %v1307_v50 = vrot.slane %v1293_v54, %v2190_v10  ;;  %v1355_v56 = vmul.f32 %v1339_v3, %v2439_v0  ;;  %v1356_v59 = vmul.f32 %v1340_v40, %v2488_v8  ;;  %v1357_v62 = vmul.f32 %v1341_v28, %v2492_v37  ;;  %v337_v25 = vld [vmem:[#allocation16 + $0x18] sm:$0xff]  ;;  %v352_v4 = vld [vmem:[#allocation17 + $0x10] sm:$0xff] }
 0x135   :  { %v1358_v61 = vmul.f32 %v1342_v22, %v2496_v47  ;;  %v1359_v39 = vmul.f32 %v1343_v41, %v2500_v32  ;;  %v513_v58 = vsel %vm378_vm0, %v338_v18, 0.0  ;;  %v514_v21 = vsel %vm378_vm0, %v339_v26, 0.0  ;;  %v353_v7 = vld [vmem:[#allocation17 + $0x18] sm:$0xff] }
 0x136   :  { %v1308_v31 = vcombine.low %v1300_v49, %v1307_v50  ;;  %v1368_v48 = vadd.f32 %v1356_v59, %v1352_v43  ;;  %v1377_v33 = vadd.f32 %v1357_v62, %v1353_v16  ;;  %v515_v44 = vsel %vm378_vm0, %v340_v23, 0.0 }
 0x137   :  { %v1386_v1 = vadd.f32 %v1358_v61, %v1354_v63  ;;  %v1395_v2 = vadd.f32 %v1359_v39, %v1355_v56  ;;  %v516_v30 = vsel %vm378_vm0, %v341_v60, 0.0  ;;  %v529_v11 = vsel %vm378_vm0, %v354_v19, 0.0 }
 0x138   :  { %v1315_v27 = vrot.slane %v1308_v31, %v2190_v10  ;;  %v1371_v36 = vrot.slane %v1368_v48, 4  ;;  %v1380_v55 = vrot.slane %v1377_v33, 4  ;;  %v530_v53 = vsel %vm378_vm0, %v355_v14, 0.0 }
 0x139   :  { %v1389_v45 = vrot.slane %v1386_v1, 4  ;;  %v1398_v12 = vrot.slane %v1395_v2, 4  ;;  %v531_v34 = vsel %vm378_vm0, %v356_v17, 0.0  ;;  %v532_v5 = vsel %vm378_vm0, %v357_v24, 0.0 }
 0x13a   :  { %1650 = vst.msk [vmem:[%s2702_s11 + $0x5] ss:$8 sm:$0xf] %vm2425_vm1, %v1315_v27  ;;  %v1372_v42 = vadd.f32 %v1371_v36, %v1368_v48  ;;  %v1381_v18 = vadd.f32 %v1380_v55, %v1377_v33  ;;  %v1436_v26 = vsub.f32 %v334_v13, %v350_v51  ;;  %v1437_v52 = vsub.f32 %v335_v57, %v351_v38 }
 0x13b   :  { %v1390_v20 = vadd.f32 %v1389_v45, %v1386_v1  ;;  %v1399_v3 = vadd.f32 %v1398_v12, %v1395_v2  ;;  %v1438_v40 = vsub.f32 %v336_v15, %v352_v4  ;;  %v1439_v54 = vsub.f32 %v337_v25, %v353_v7 }
 0x13c   :  { %v1373_v28 = vrot.slane %v1372_v42, 2  ;;  %v1382_v22 = vrot.slane %v1381_v18, 2  ;;  %v1440_v41 = vsub.f32 %v513_v58, %v529_v11  ;;  %v1441_v49 = vsub.f32 %v514_v21, %v530_v53 }
 0x13d   :  { %v1391_v6 = vrot.slane %v1390_v20, 2  ;;  %v1400_v43 = vrot.slane %v1399_v3, 2  ;;  %v1442_v16 = vsub.f32 %v515_v44, %v531_v34  ;;  %v1443_v63 = vsub.f32 %v516_v30, %v532_v5 }
 0x13e   :  { %v1374_v23 = vadd.f32 %v1373_v28, %v1372_v42  ;;  %v1383_v50 = vadd.f32 %v1382_v22, %v1381_v18  ;;  %v1452_v56 = vand.u32 2147483647, %v1436_v26  ;;  %v1453_v59 = vand.u32 2147483647, %v1437_v52 }
 0x13f   :  { %v1392_v62 = vadd.f32 %v1391_v6, %v1390_v20  ;;  %v1401_v60 = vadd.f32 %v1400_v43, %v1399_v3  ;;  %v1454_v19 = vand.u32 2147483647, %v1438_v40  ;;  %v1455_v61 = vand.u32 2147483647, %v1439_v54 }
 0x140   :  { %v1375_v39 = vrot.slane %v1374_v23, 1  ;;  %v1384_v13 = vrot.slane %v1383_v50, 1  ;;  %v1456_v14 = vand.u32 2147483647, %v1440_v41  ;;  %v1457_v31 = vand.u32 2147483647, %v1441_v49 }
 0x141   :  { %v1393_v48 = vrot.slane %v1392_v62, 1  ;;  %v1402_v33 = vrot.slane %v1401_v60, 1  ;;  %v1458_v58 = vand.u32 2147483647, %v1442_v16  ;;  %v1459_v21 = vand.u32 2147483647, %v1443_v63 }
 0x142   :  { %v1376_v57 = vadd.f32 %v1375_v39, %v1374_v23  ;;  %v1385_v17 = vadd.f32 %v1384_v13, %v1383_v50  ;;  %v1468_v24 = vmul.f32 %v1452_v56, %v2417_v29  ;;  %v1469_v44 = vmul.f32 %v1453_v59, %v2434_v46 }
 0x143   :  { %v1394_v1 = vadd.f32 %v1393_v48, %v1392_v62  ;;  %v1403_v2 = vadd.f32 %v1402_v33, %v1401_v60  ;;  %v1470_v15 = vmul.f32 %v1454_v19, %v2437_v35  ;;  %v1471_v51 = vmul.f32 %v1455_v61, %v2439_v0 }
 0x144   :  { %v1408_v38 = vcombine.low %v1376_v57, %v1385_v17  ;;  %v1472_v30 = vmul.f32 %v1456_v14, %v2488_v8  ;;  %v1473_v11 = vmul.f32 %v1457_v31, %v2492_v37  ;;  %v1474_v27 = vmul.f32 %v1458_v58, %v2496_v47 }
 0x145   :  { %v1409_v36 = vcombine.low %v1394_v1, %v1403_v2  ;;  %v1475_v55 = vmul.f32 %v1459_v21, %v2500_v32  ;;  %v1552_v25 = vadd.f32 %v2488_v8, %v2417_v29  ;;  %v1561_v4 = vadd.f32 %v2492_v37, %v2434_v46 }
 0x146   :  { %v1416_v7 = vrot.slane %v1408_v38, %v2190_v10  ;;  %v1484_v53 = vadd.f32 %v1472_v30, %v1468_v24  ;;  %v1493_v45 = vadd.f32 %v1473_v11, %v1469_v44  ;;  %v1502_v12 = vadd.f32 %v1474_v27, %v1470_v15 }
 0x147   :  { %v1423_v34 = vrot.slane %v1409_v36, %v2190_v10  ;;  %v1511_v5 = vadd.f32 %v1475_v55, %v1471_v51  ;;  %v1555_v42 = vrot.slane %v1552_v25, 4  ;;  %v1564_v18 = vrot.slane %v1561_v4, 4 }
 0x148   :  { %v1487_v26 = vrot.slane %v1484_v53, 4  ;;  %v1496_v52 = vrot.slane %v1493_v45, 4  ;;  %v1505_v20 = vrot.slane %v1502_v12, 4  ;;  %v1570_v3 = vadd.f32 %v2496_v47, %v2437_v35 }
 0x149   :  { %v1424_v29 = vcombine.low %v1416_v7, %v1423_v34  ;;  %v1514_v8 = vrot.slane %v1511_v5, 4  ;;  %v1556_v40 = vadd.f32 %v1555_v42, %v1552_v25  ;;  %v1565_v46 = vadd.f32 %v1564_v18, %v1561_v4 }
 0x14a   :  { %v1488_v37 = vadd.f32 %v1487_v26, %v1484_v53  ;;  %v1497_v54 = vadd.f32 %v1496_v52, %v1493_v45  ;;  %v1506_v28 = vadd.f32 %v1505_v20, %v1502_v12  ;;  %v1573_v22 = vrot.slane %v1570_v3, 4 }
 0x14b   :  { %v1431_v41 = vrot.slane %v1424_v29, %v2190_v10  ;;  %v1515_v49 = vadd.f32 %v1514_v8, %v1511_v5  ;;  %v1557_v6 = vrot.slane %v1556_v40, 2  ;;  %v1566_v43 = vrot.slane %v1565_v46, 2 }
 0x14c   :  { %v1489_v16 = vrot.slane %v1488_v37, 2  ;;  %v1498_v63 = vrot.slane %v1497_v54, 2  ;;  %v1507_v23 = vrot.slane %v1506_v28, 2  ;;  %v1574_v50 = vadd.f32 %v1573_v22, %v1570_v3 }
 0x14d   :  { %1651 = vst.msk [vmem:[%s2702_s11 + $0x6] ss:$8 sm:$0xf] %vm2425_vm1, %v1431_v41  ;;  %v1516_v35 = vrot.slane %v1515_v49, 2  ;;  %v1558_v47 = vadd.f32 %v1557_v6, %v1556_v40  ;;  %v1567_v56 = vadd.f32 %v1566_v43, %v1565_v46  ;;  %v1579_v59 = vadd.f32 %v2500_v32, %v2439_v0 }
 0x14e   :  { %v1490_v62 = vadd.f32 %v1489_v16, %v1488_v37  ;;  %v1499_v60 = vadd.f32 %v1498_v63, %v1497_v54  ;;  %v1508_v19 = vadd.f32 %v1507_v23, %v1506_v28  ;;  %v1575_v61 = vrot.slane %v1574_v50, 2 }
 0x14f   :  { %v1517_v39 = vadd.f32 %v1516_v35, %v1515_v49  ;;  %v1559_v13 = vrot.slane %v1558_v47, 1  ;;  %v1568_v14 = vrot.slane %v1567_v56, 1  ;;  %v1582_v31 = vrot.slane %v1579_v59, 4 }
 0x150   :  { %v1491_v48 = vrot.slane %v1490_v62, 1  ;;  %v1500_v33 = vrot.slane %v1499_v60, 1  ;;  %v1509_v58 = vrot.slane %v1508_v19, 1  ;;  %v1576_v21 = vadd.f32 %v1575_v61, %v1574_v50 }
 0x151   :  { %v1518_v57 = vrot.slane %v1517_v39, 1  ;;  %v1560_v17 = vadd.f32 %v1559_v13, %v1558_v47  ;;  %v1569_v24 = vadd.f32 %v1568_v14, %v1567_v56  ;;  %v1583_v44 = vadd.f32 %v1582_v31, %v1579_v59 }
 0x152   :  { %v1492_v1 = vadd.f32 %v1491_v48, %v1490_v62  ;;  %v1501_v2 = vadd.f32 %v1500_v33, %v1499_v60  ;;  %v1510_v15 = vadd.f32 %v1509_v58, %v1508_v19  ;;  %v1577_v32 = vrot.slane %v1576_v21, 1 }
 0x153   :  { %v1519_v0 = vadd.f32 %v1518_v57, %v1517_v39  ;;  %v1584_v51 = vrot.slane %v1583_v44, 2  ;;  %v1592_v38 = vcombine.low %v1560_v17, %v1569_v24 }
 0x154   :  { %v1524_v30 = vcombine.low %v1492_v1, %v1501_v2  ;;  %v1578_v25 = vadd.f32 %v1577_v32, %v1576_v21 }
 0x155   :  { %v1525_v11 = vcombine.low %v1510_v15, %v1519_v0  ;;  %v1585_v27 = vadd.f32 %v1584_v51, %v1583_v44  ;;  %v1600_v34 = vrot.slane %v1592_v38, %v2190_v10 }
 0x156   :  { %v1532_v36 = vrot.slane %v1524_v30, %v2190_v10 }
 0x157   :  { %v1539_v55 = vrot.slane %v1525_v11, %v2190_v10  ;;  %v1586_v4 = vrot.slane %v1585_v27, 1 }
 0x159   :  { %v1540_v7 = vcombine.low %v1532_v36, %v1539_v55  ;;  %v1587_v53 = vadd.f32 %v1586_v4, %v1585_v27 }
 0x15b   :  { %v1547_v45 = vrot.slane %v1540_v7, %v2190_v10  ;;  %v1593_v12 = vcombine.low %v1578_v25, %v1587_v53 }
 0x15d   :  { %1652 = vst.msk [vmem:[%s2702_s11 + $0x7] ss:$8 sm:$0xf] %vm2425_vm1, %v1547_v45  ;;  %v1607_v5 = vrot.slane %v1593_v12, %v2190_v10 }
 0x15f   :  { %v1608_v42 = vcombine.low %v1600_v34, %v1607_v5 }
 0x161   :  { %v1615_v18 = vrot.slane %v1608_v42, %v2190_v10 }
 0x163   :  { %1653 = vst.msk [vmem:[%s2702_s11 + $0x20] ss:$8 sm:$0xf] %vm2425_vm1, %v1615_v18 }
 0x164   :  { %1624 = vsyncadd [#allocation4], 1024  ;;  %s1975_s14 = smov [#allocation19]  }
 0x165   :  { %s1625_s22 = sshll.u32 %s1975_s14, 4  ;;  %s1626_s22 = int_to_ptr.vmem [resolvable:$true] %s1625_s22 }
 0x166   :  { %s1923_s4 = scalar_lea.vmem %s1626_s22, 1024  ;;  %s1927_s21 = scalar_lea.vmem %s1626_s22, 2048 }
 0x167   :  { %p1924_p10 = scmp.ne.s32.totalorder %s1626_s22, %s1923_s4  ;;  %p1928_p11 = scmp.lt.s32.totalorder %s1626_s22, %s1626_s22 }
 0x168   :  { %p1929_p12 = scmp.lt.s32.totalorder %s1927_s21, %s1923_s4 }
 0x16a   :  { %p1930_p13 = por %p1929_p12, %p1928_p11 }
 0x16c   :  { %p1931_p0 = pnand %p1930_p13, %p1924_p10 }
 0x16e   :  { %1934 = shalt.err (!%p1931_p0)
}
 0x16f   :  { %s1935_s8 = scalar_lea.hbm %s2701_s10, 1024 }
 0x170   :  { %p1936_p1 = scmp.ne.s32.totalorder %s2701_s10, %s1935_s8  ;;  %p1939_p2 = scmp.lt.u32.totalorder %s1935_s8, %s2701_s10 }
 0x172   :  { %p1941_p3 = pnand %p1939_p2, %p1936_p1 }
 0x174   :  { %1944 = shalt.err (!%p1941_p3)
}
 0x175   :  { %1631 = dma.vmem_to_hbm [thread:$0]  %s1626_s22, 1024, %s2701_s10, [#allocation4], %s1960_s28, %s1960_s28, %s1961_s29  }
 0x176   :  { %1957 = dma.done.wait [#allocation4], 2048  }
 0x177   :  { %1958 = vsyncadd [#allocation4], 4294965248 }
 0x178   :  { %1639 = vsyncpa [#allocation3], 1 }
 0x179   :  { %1640 = vsyncpa [#allocation6], 1 }
 0x17a   :  { %1641 = vsyncpa [#allocation9], 1 }
 0x17b   :  { %1642 = vsyncpa [#allocation12], 1 }
 0x17c   :  { %1643 = vsyncpa [#allocation15], 1 }
 0x17d   :  { %1644 = vsyncpa [#allocation18], 1 }
 0x17e   :  { %1645 = vsyncpa [#allocation4], 1 }

</bundles_post_ra>
